<compile_context>
chip_gen: v7x
topology: tpu7x:2x2x1
jax: 0.10.0
libtpu: 0.0.40
codegen_flags: <defaults>
</compile_context>

<pallas_src>
import functools

import numpy as np
import jax
import jax.numpy as jnp
from jax import lax
from jax.experimental import pallas as pl
from jax.experimental.pallas import tpu as pltpu

# pysc2 function ids (actions.FUNCTIONS.<name>.id), hard-coded so no pysc2 dependency.
_NO_OP = 0
_SELECT_ARMY = 7
_MOVE_SCREEN = 12  # Attack_screen
ACTION_DICT = {0: _NO_OP, 1: _SELECT_ARMY, 2: _MOVE_SCREEN}

_LN_EPS = 1e-5

# Kernel-side parameter order (all resident).  *_bd are BS-block-diagonal versions of
# the conv / projection weights; posbt / bconv_bd are tiled to the block; selr / eyet
# are the resident regroup matrices; mask_bias is the additive 0/-inf action mask.
PARAM_NAMES = (
    "wconv_bd", "bconv_bd", "wproj_bd", "posbt", "selr", "eyet",
    "pg", "pb", "pw1", "pb1", "pw2", "pb2",
    "fg", "fb", "fw1", "fb1", "fw2", "fb2",
    "wlin", "blin", "mask_bias",
)


# ----------------------------- kernel-side math -----------------------------

def _residual_layer(x, g, b, w1, b1, w2, b2):
    """x + Linear2(ReLU(Linear1(LayerNorm(x)))), LN over the last axis.

    Two-pass variance E[(x-mu)^2] (exactly the torch LayerNorm form); rsqrt lands on
    the EUP slot.
    """
    mu = jnp.mean(x, axis=-1, keepdims=True)
    xc = x - mu
    var = jnp.mean(xc * xc, axis=-1, keepdims=True)
    xn = xc * (lax.rsqrt(var + _LN_EPS) * g) + b
    h = jnp.maximum(jnp.dot(xn, w1, preferred_element_type=jnp.float32) + b1, 0.0)
    return x + jnp.dot(h, w2, preferred_element_type=jnp.float32) + b2


def ohe_actor_kernel(xcol_ref, *refs, n_pix_layers, n_feat_layers):
    """Forward pass for ONE block of BS samples, feature-major layout.

    xcol_ref: (1, BS*9C, P) im2col'd state rows for the block (sample-major stacking)
    """
    param_refs = dict(zip(PARAM_NAMES, refs[:len(PARAM_NAMES)]))
    logp_ref, feat_ref = refs[len(PARAM_NAMES):]

    def getp(name, idx=None):
        # Deferred loads: each parameter (slice) is pulled from its VMEM ref right
        # where it is consumed, keeping vreg live ranges short.
        r = param_refs[name]
        if idx is None:
            return r[...]
        if len(r.shape) == 3:
            return r[idx]                  # (.., ..) weight matrix of layer `idx`
        return r[idx:idx + 1, :]           # (1, ..) gamma/beta/bias row of layer `idx`

    xcol = xcol_ref[0]                                                  # (BS*9C, P)

    # --- OheNet.OHE_conv: 3x3 valid conv as ONE block-diagonal im2col matmul.
    conv = jnp.dot(getp("wconv_bd"), xcol, preferred_element_type=jnp.float32)
    conv = jnp.maximum(conv + getp("bconv_bd"), 0.0)                    # (BS*k_out, P)

    # --- feature projection produced directly feature-major, + precomputed positional
    #     encoding / projection bias (already tiled to the block).
    y = jnp.dot(getp("wproj_bd"), conv,
                preferred_element_type=jnp.float32) + getp("posbt")     # (BS*F, P)

    # --- pixel residual block: rows = (sample, feature), LayerNorm/MLP over pixels.
    for l in range(n_pix_layers):
        y = _residual_layer(y, getp("pg", l), getp("pb", l), getp("pw1", l),
                            getp("pb1", l), getp("pw2", l), getp("pb2", l))

    # --- feature-wise max pool over pixels, then regroup (BS*F, 1) -> (BS, F) via
    #     resident selector matrices (no in-kernel iota/identity, no relayout reshape).
    pooled = jnp.max(y, axis=-1, keepdims=True)                         # (BS*F, 1)
    feat = jnp.dot(getp("selr"), pooled * getp("eyet"),
                   preferred_element_type=jnp.float32)                  # (BS, F)

    # --- feature residual block.
    for l in range(n_feat_layers):
        feat = _residual_layer(feat, getp("fg", l), getp("fb", l), getp("fw1", l),
                               getp("fb1", l), getp("fw2", l), getp("fb2", l))

    # --- actor head: linear -> additive 0/-inf mask -> log_softmax.
    logits = jnp.dot(feat, getp("wlin"),
                     preferred_element_type=jnp.float32) + getp("blin")
    logits = logits + getp("mask_bias")
    m = jnp.max(logits, axis=-1, keepdims=True)
    s = logits - m
    log_probs = s - jnp.log(jnp.sum(jnp.exp(s), axis=-1, keepdims=True))

    logp_ref[0] = log_probs                                             # (BS, A)
    feat_ref[0] = feat                                                  # (BS, F)


# ----------------------------- glue (plain JAX) -----------------------------

def _positional_coords(map_size):
    """(P, 2) coords in [-1, 1]; coord 0 varies with row i, coord 1 with col j."""
    lin = jnp.linspace(-1.0, 1.0, map_size).astype(jnp.float32)
    xx = jnp.repeat(lin, map_size)
    yy = jnp.tile(lin, map_size)
    return jnp.stack([xx, yy], axis=1)


def get_action_mask(available_actions):
    """True where the action must be masked out (mirror of the numpy code in torch)."""
    return ~np.array([ACTION_DICT[i] in available_actions for i in ACTION_DICT.keys()])


def _choose_block_size(batch, n_features):
    """Samples per grid step: keep a >=2-wide parallel axis (v7x megacore) while making
    the pixel-residual tile at least ~64-128 sublanes when the batch allows it."""
    if batch <= 1:
        return 1
    bs = -(-batch // 2)                               # ceil(B/2): grid stays >=2 wide
    bs = min(bs, max(1, 256 // max(int(n_features), 1)))   # cap block-diag / VMEM growth
    return max(int(bs), 1)


def _kernel_param_layout(params, block_size):
    """Re-lay-out the canonical (torch-like) parameters for the batched kernel."""
    k_out, c_in, _, _ = params["wconv"].shape
    n_features = params["wproj_c"].shape[1]
    eye_bs = jnp.eye(block_size, dtype=jnp.float32)

    # wconv[o, c, di, dj] -> (k_out, 9C) with column index (di*3 + dj)*C + c, matching
    # the wrapper's im2col row ordering.
    wconv_mat = jnp.transpose(params["wconv"], (0, 2, 3, 1)).reshape(
        k_out, 9 * c_in).astype(jnp.float32)

    kp = {n: params[n].astype(jnp.float32)
          for n in ("pg", "pb", "pw1", "pb1", "pw2", "pb2",
                    "fg", "fb", "fw1", "fb1", "fw2", "fb2", "wlin", "blin")}
    kp["wconv_bd"] = jnp.kron(eye_bs, wconv_mat)
    kp["bconv_bd"] = jnp.tile(params["bconv"].reshape(k_out, 1).astype(jnp.float32),
                              (block_size, 1))
    kp["wproj_bd"] = jnp.kron(eye_bs, jnp.transpose(params["wproj_c"]).astype(jnp.float32))
    kp["selr"] = jnp.kron(eye_bs, jnp.ones((1, n_features), jnp.float32))
    kp["eyet"] = jnp.tile(jnp.eye(n_features, dtype=jnp.float32), (block_size, 1))
    return kp


def ohe_param_actor_forward(state_nchw, available_actions, params, block_size=None):
    B, C, L, _ = state_nchw.shape
    M = L - 2
    P = M * M
    k_out = params["wproj_c"].shape[0]
    F = params["wproj_c"].shape[1]
    A = params["wlin"].shape[1]
    HP = params["pw1"].shape[2]
    HF = params["fw1"].shape[2]
    n_pix = params["pw1"].shape[0]
    n_feat = params["fw1"].shape[0]

    BS = _choose_block_size(B, F) if block_size is None else int(block_size)
    G = -(-B // BS)
    Bp = G * BS

    # Full im2col in the wrapper: (B, 9C, P), row index = (di*3 + dj)*C + c, so the
    # whole conv is a single aligned matmul in the kernel (no lane-offset slices).
    patches = [state_nchw[:, :, di:di + M, dj:dj + M]
               for di in range(3) for dj in range(3)]
    xcol = jnp.concatenate(patches, axis=1).reshape(B, 9 * C, P).astype(jnp.float32)
    if Bp != B:
        xcol = jnp.concatenate(
            [xcol, jnp.zeros((Bp - B, 9 * C, P), jnp.float32)], axis=0)
    xcol = xcol.reshape(G, BS * 9 * C, P)            # BS samples stacked along sublanes

    # Positional encoding + projection bias, precomputed once, feature-major (F, P),
    # tiled to the block.
    coords = _positional_coords(M)
    posbT = jnp.transpose(coords @ params["wproj_p"] + params["bproj"]).astype(jnp.float32)

    # Action mask as an additive 0 / -inf bias (no per-step compare+select).
    mask_bool = get_action_mask(available_actions)
    mask_bias = jnp.where(jnp.asarray(mask_bool)[None, :], -jnp.inf, 0.0).astype(jnp.float32)

    kparams = _kernel_param_layout(params, BS)
    kparams["posbt"] = jnp.tile(posbT, (BS, 1))
    kparams["mask_bias"] = mask_bias

    inputs = [xcol] + [kparams[n] for n in PARAM_NAMES]

    def resident(arr):
        nd = arr.ndim
        return pl.BlockSpec(arr.shape, lambda g, _nd=nd: (0,) * _nd)

    in_specs = ([pl.BlockSpec((1, BS * 9 * C, P), lambda g: (g, 0, 0))]
                + [resident(kparams[n]) for n in PARAM_NAMES])

    out_shape = (jax.ShapeDtypeStruct((G, BS, A), jnp.float32),
                 jax.ShapeDtypeStruct((G, BS, F), jnp.float32))
    out_specs = (pl.BlockSpec((1, BS, A), lambda g: (g, 0, 0)),
                 pl.BlockSpec((1, BS, F), lambda g: (g, 0, 0)))

    # Advisory cost estimate so XLA can schedule around the custom call.
    flops_step = (2 * (BS * k_out) * (BS * 9 * C) * P      # block-diag conv
                  + 2 * (BS * F) * (BS * k_out) * P        # block-diag projection
                  + n_pix * 4 * (BS * F) * P * HP          # pixel residual MLPs
                  + 2 * BS * (BS * F) * F                  # pool regroup selector dot
                  + n_feat * 4 * BS * F * HF               # feature residual MLPs
                  + 2 * BS * F * A)                        # actor head
    flops = G * flops_step
    transcendentals = G * (n_pix * BS * F + n_feat * BS + BS * (A + 1))
    bytes_accessed = int(sum(x.size * x.dtype.itemsize for x in inputs)
                         + G * BS * (A + F) * 4)

    kernel = functools.partial(ohe_actor_kernel,
                               n_pix_layers=n_pix, n_feat_layers=n_feat)

    log_probs3, feat3 = pl.pallas_call(
        kernel,
        grid=(G,),
        in_specs=in_specs,
        out_specs=out_specs,
        out_shape=out_shape,
        compiler_params=pltpu.CompilerParams(
            dimension_semantics=("parallel",),
            vmem_limit_bytes=32 * 1024 * 1024),
        cost_estimate=pl.CostEstimate(flops=int(flops),
                                      transcendentals=int(transcendentals),
                                      bytes_accessed=bytes_accessed),
    )(*inputs)

    log_probs = log_probs3.reshape(Bp, A)[:B]
    feat = feat3.reshape(Bp, F)[:B]
    return log_probs, feat


# ------------------- torch-faithful pure-JAX reference ----------------------

def _im2col_3x3_valid(x_nchw):
    """(B, C, L, L) NCHW -> (B, (L-2)**2, C*9) patches; column index = c*9 + di*3 + dj."""
    B, C, L, _ = x_nchw.shape
    M = L - 2
    cols = []
    for c in range(C):
        for di in range(3):
            for dj in range(3):
                cols.append(x_nchw[:, c, di:di + M, dj:dj + M].reshape(B, M * M))
    return jnp.stack(cols, axis=-1).astype(jnp.float32)


def _residual_layer_ref(x, g, b, w1, b1, w2, b2):
    mu = jnp.mean(x, axis=-1, keepdims=True)
    var = jnp.mean(jnp.square(x - mu), axis=-1, keepdims=True)
    xn = (x - mu) * lax.rsqrt(var + _LN_EPS) * g + b
    h = jnp.maximum(jnp.dot(xn, w1) + b1, 0.0)
    return x + jnp.dot(h, w2) + b2


def _reference_forward(state_nchw, coords, maskf, params):
    """Torch-faithful formulation: im2col -> (B,P,F) layout -> swapaxes pixel block."""
    B, C, L, _ = state_nchw.shape
    M = L - 2
    P = M * M
    F = params["wproj_c"].shape[1]

    patches = _im2col_3x3_valid(state_nchw).reshape(B * P, C * 9)
    wconv_mat = jnp.transpose(params["wconv"], (1, 2, 3, 0)).reshape(C * 9, -1)
    conv = jnp.maximum(patches @ wconv_mat + params["bconv"][None, :], 0.0)

    pos = coords @ params["wproj_p"]                                    # (P, F)
    proj = conv @ params["wproj_c"] + params["bproj"]                   # (B*P, F)
    xf = proj.reshape(B, P, F) + pos[None, :, :]

    y = jnp.swapaxes(xf, 1, 2).reshape(B * F, P)
    for l in range(params["pw1"].shape[0]):
        y = _residual_layer_ref(y, params["pg"][l:l + 1], params["pb"][l:l + 1],
                                params["pw1"][l], params["pb1"][l:l + 1],
                                params["pw2"][l], params["pb2"][l:l + 1])

    feat = jnp.max(y.reshape(B, F, P), axis=-1)
    for l in range(params["fw1"].shape[0]):
        feat = _residual_layer_ref(feat, params["fg"][l:l + 1], params["fb"][l:l + 1],
                                   params["fw1"][l], params["fb1"][l:l + 1],
                                   params["fw2"][l], params["fb2"][l:l + 1])

    logits = feat @ params["wlin"] + params["blin"]
    logits = jnp.where(maskf > 0.5, -jnp.inf, logits)
    m = jnp.max(logits, axis=-1, keepdims=True)
    s = logits - m
    log_probs = s - jnp.log(jnp.sum(jnp.exp(s), axis=-1, keepdims=True))
    return log_probs, feat


def init_params(key, *, k_in, k_out, n_features, map_size, pixel_hidden,
                feature_hidden, n_pix_res, n_feat_res, action_space):
    P = map_size * map_size
    keys = iter(jax.random.split(key, 32))

    def w(shape, fan_in):
        return (jax.random.normal(next(keys), shape) / np.sqrt(fan_in)).astype(jnp.float32)

    def b(shape):
        return (0.01 * jax.random.normal(next(keys), shape)).astype(jnp.float32)

    return dict(
        wconv=w((k_out, k_in, 3, 3), k_in * 9), bconv=b((k_out,)),
        wproj_c=w((k_out, n_features), k_out), wproj_p=w((2, n_features), 2),
        bproj=b((1, n_features)),
        pg=jnp.ones((n_pix_res, P), jnp.float32), pb=jnp.zeros((n_pix_res, P), jnp.float32),
        pw1=w((n_pix_res, P, pixel_hidden), P), pb1=b((n_pix_res, pixel_hidden)),
        pw2=w((n_pix_res, pixel_hidden, P), pixel_hidden), pb2=b((n_pix_res, P)),
        fg=jnp.ones((n_feat_res, n_features), jnp.float32),
        fb=jnp.zeros((n_feat_res, n_features), jnp.float32),
        fw1=w((n_feat_res, n_features, feature_hidden), n_features),
        fb1=b((n_feat_res, feature_hidden)),
        fw2=w((n_feat_res, feature_hidden, n_features), feature_hidden),
        fb2=b((n_feat_res, n_features)),
        wlin=w((n_features, action_space), n_features), blin=b((1, action_space)),
    )


if __name__ == "__main__":
    K_IN, L = 4, 10                  # state: (B, k_in, map_size+2, map_size+2), map_size = 8
    MAP = L - 2
    K_OUT, NF, HP, HF = 24, 32, 128, 64
    NPR, NFR, ACTION_SPACE = 4, 4, 3

    key = jax.random.PRNGKey(0)
    k_state, k_state2, k_params = jax.random.split(key, 3)
    params = init_params(
        k_params, k_in=K_IN, k_out=K_OUT, n_features=NF, map_size=MAP,
        pixel_hidden=HP, feature_hidden=HF, n_pix_res=NPR, n_feat_res=NFR,
        action_space=ACTION_SPACE)

    # Attack_screen (_MOVE_SCREEN) is NOT available -> its logit gets masked to -inf.
    available_actions = [_NO_OP, _SELECT_ARMY]
    coords = _positional_coords(MAP)
    mask_bool = get_action_mask(available_actions)
    maskf = jnp.asarray(mask_bool, jnp.float32)[None, :]
    ref_fn = jax.jit(_reference_forward)

    def check(state):
        log_probs, out = ohe_param_actor_forward(state, available_actions, params)
        jax.block_until_ready((log_probs, out))
        ref_logp, ref_out = ref_fn(state, coords, maskf, params)
        lp, rlp = np.asarray(log_probs), np.asarray(ref_logp)
        finite = np.isfinite(rlp)
        assert np.allclose(np.asarray(out), np.asarray(ref_out), rtol=1e-3, atol=1e-3)
        assert np.allclose(lp[finite], rlp[finite], rtol=1e-3, atol=1e-3)
        assert np.all(np.isneginf(lp[:, np.asarray(mask_bool)]))

    # Small batch (B=2 -> BS=1, grid=2: 2-wide parallel axis for v7x).
    check(jax.random.normal(k_state, (2, K_IN, L, L), dtype=jnp.float32))
    # Larger batch exercising the batched (block-diagonal) path + padding
    # (B=5 -> BS=3, grid=2, one zero-padded sample sliced off).
    check(jax.random.normal(k_state2, (5, K_IN, L, L), dtype=jnp.float32))

    print("KERNEL_OK")
</pallas_src>

<mosaic_0001>
module attributes {stable_mosaic.version = 11 : i64} {
  func.func @ohe_actor_kernel(%arg0: i32, %arg1: memref<1x36x64xf32, #tpu.memory_space<vmem>>, %arg2: memref<24x36xf32, #tpu.memory_space<vmem>>, %arg3: memref<24x1xf32, #tpu.memory_space<vmem>>, %arg4: memref<32x24xf32, #tpu.memory_space<vmem>>, %arg5: memref<32x64xf32, #tpu.memory_space<vmem>>, %arg6: memref<1x32xf32, #tpu.memory_space<vmem>>, %arg7: memref<32x32xf32, #tpu.memory_space<vmem>>, %arg8: memref<4x64xf32, #tpu.memory_space<vmem>>, %arg9: memref<4x64xf32, #tpu.memory_space<vmem>>, %arg10: memref<4x64x128xf32, #tpu.memory_space<vmem>>, %arg11: memref<4x128xf32, #tpu.memory_space<vmem>>, %arg12: memref<4x128x64xf32, #tpu.memory_space<vmem>>, %arg13: memref<4x64xf32, #tpu.memory_space<vmem>>, %arg14: memref<4x32xf32, #tpu.memory_space<vmem>>, %arg15: memref<4x32xf32, #tpu.memory_space<vmem>>, %arg16: memref<4x32x64xf32, #tpu.memory_space<vmem>>, %arg17: memref<4x64xf32, #tpu.memory_space<vmem>>, %arg18: memref<4x64x32xf32, #tpu.memory_space<vmem>>, %arg19: memref<4x32xf32, #tpu.memory_space<vmem>>, %arg20: memref<32x3xf32, #tpu.memory_space<vmem>>, %arg21: memref<1x3xf32, #tpu.memory_space<vmem>>, %arg22: memref<1x3xf32, #tpu.memory_space<vmem>>, %arg23: memref<1x1x3xf32, #tpu.memory_space<vmem>>, %arg24: memref<1x1x32xf32, #tpu.memory_space<vmem>>) attributes {dimension_semantics = [#tpu.dimension_semantics<parallel>], iteration_bounds = array<i64: 2>, scalar_prefetch = 0 : i64, scratch_operands = 0 : i64, tpu.core_type = #tpu.core_type<tc>, window_params = [{transform_indices = @transform_0, window_bounds = array<i64: 1, 36, 64>}, {pipeline_mode = #tpu.pipeline_mode<synchronous>, transform_indices = @transform_1, window_bounds = array<i64: 24, 36>}, {pipeline_mode = #tpu.pipeline_mode<synchronous>, transform_indices = @transform_2, window_bounds = array<i64: 24, 1>}, {pipeline_mode = #tpu.pipeline_mode<synchronous>, transform_indices = @transform_3, window_bounds = array<i64: 32, 24>}, {pipeline_mode = #tpu.pipeline_mode<synchronous>, transform_indices = @transform_4, window_bounds = array<i64: 32, 64>}, {pipeline_mode = #tpu.pipeline_mode<synchronous>, transform_indices = @transform_5, window_bounds = array<i64: 1, 32>}, {pipeline_mode = #tpu.pipeline_mode<synchronous>, transform_indices = @transform_6, window_bounds = array<i64: 32, 32>}, {pipeline_mode = #tpu.pipeline_mode<synchronous>, transform_indices = @transform_7, window_bounds = array<i64: 4, 64>}, {pipeline_mode = #tpu.pipeline_mode<synchronous>, transform_indices = @transform_8, window_bounds = array<i64: 4, 64>}, {pipeline_mode = #tpu.pipeline_mode<synchronous>, transform_indices = @transform_9, window_bounds = array<i64: 4, 64, 128>}, {pipeline_mode = #tpu.pipeline_mode<synchronous>, transform_indices = @transform_10, window_bounds = array<i64: 4, 128>}, {pipeline_mode = #tpu.pipeline_mode<synchronous>, transform_indices = @transform_11, window_bounds = array<i64: 4, 128, 64>}, {pipeline_mode = #tpu.pipeline_mode<synchronous>, transform_indices = @transform_12, window_bounds = array<i64: 4, 64>}, {pipeline_mode = #tpu.pipeline_mode<synchronous>, transform_indices = @transform_13, window_bounds = array<i64: 4, 32>}, {pipeline_mode = #tpu.pipeline_mode<synchronous>, transform_indices = @transform_14, window_bounds = array<i64: 4, 32>}, {pipeline_mode = #tpu.pipeline_mode<synchronous>, transform_indices = @transform_15, window_bounds = array<i64: 4, 32, 64>}, {pipeline_mode = #tpu.pipeline_mode<synchronous>, transform_indices = @transform_16, window_bounds = array<i64: 4, 64>}, {pipeline_mode = #tpu.pipeline_mode<synchronous>, transform_indices = @transform_17, window_bounds = array<i64: 4, 64, 32>}, {pipeline_mode = #tpu.pipeline_mode<synchronous>, transform_indices = @transform_18, window_bounds = array<i64: 4, 32>}, {pipeline_mode = #tpu.pipeline_mode<synchronous>, transform_indices = @transform_19, window_bounds = array<i64: 32, 3>}, {pipeline_mode = #tpu.pipeline_mode<synchronous>, transform_indices = @transform_20, window_bounds = array<i64: 1, 3>}, {pipeline_mode = #tpu.pipeline_mode<synchronous>, transform_indices = @transform_21, window_bounds = array<i64: 1, 3>}, {transform_indices = @transform_22, window_bounds = array<i64: 1, 1, 3>}, {transform_indices = @transform_23, window_bounds = array<i64: 1, 1, 32>}]} {
    %c0 = arith.constant 0 : index
    %c0_0 = arith.constant 0 : index
    %c0_1 = arith.constant 0 : index
    %0 = vector.load %arg1[%c0, %c0_0, %c0_1] : memref<1x36x64xf32, #tpu.memory_space<vmem>>, vector<1x36x64xf32>
    %1 = vector.shape_cast %0 : vector<1x36x64xf32> to vector<36x64xf32>
    %c0_2 = arith.constant 0 : index
    %c0_3 = arith.constant 0 : index
    %2 = vector.load %arg2[%c0_2, %c0_3] : memref<24x36xf32, #tpu.memory_space<vmem>>, vector<24x36xf32>
    %cst = arith.constant dense<0.000000e+00> : vector<24x64xf32>
    %3 = tpu.matmul %2, %1, %cst {dimension_numbers = #tpu.dot_dimension_numbers<[1], [0], [0], [1], [0, 0, 1, 1], [], []>} : vector<24x36xf32>, vector<36x64xf32>, vector<24x64xf32> -> vector<24x64xf32>
    %c0_4 = arith.constant 0 : index
    %c0_5 = arith.constant 0 : index
    %4 = vector.load %arg3[%c0_4, %c0_5] : memref<24x1xf32, #tpu.memory_space<vmem>>, vector<24x1xf32>
    %5 = vector.broadcast %4 : vector<24x1xf32> to vector<24x64xf32>
    %6 = arith.addf %3, %5 : vector<24x64xf32>
    %cst_6 = arith.constant 0.000000e+00 : f32
    %7 = vector.broadcast %cst_6 : f32 to vector<24x64xf32>
    %8 = arith.maximumf %6, %7 : vector<24x64xf32>
    %c0_7 = arith.constant 0 : index
    %c0_8 = arith.constant 0 : index
    %9 = vector.load %arg4[%c0_7, %c0_8] : memref<32x24xf32, #tpu.memory_space<vmem>>, vector<32x24xf32>
    %cst_9 = arith.constant dense<0.000000e+00> : vector<32x64xf32>
    %10 = tpu.matmul %9, %8, %cst_9 {dimension_numbers = #tpu.dot_dimension_numbers<[1], [0], [0], [1], [0, 0, 1, 1], [], []>} : vector<32x24xf32>, vector<24x64xf32>, vector<32x64xf32> -> vector<32x64xf32>
    %c0_10 = arith.constant 0 : index
    %c0_11 = arith.constant 0 : index
    %11 = vector.load %arg5[%c0_10, %c0_11] : memref<32x64xf32, #tpu.memory_space<vmem>>, vector<32x64xf32>
    %12 = arith.addf %10, %11 : vector<32x64xf32>
    %c0_12 = arith.constant 0 : index
    %c0_13 = arith.constant 0 : index
    %13 = vector.load %arg8[%c0_12, %c0_13] : memref<4x64xf32, #tpu.memory_space<vmem>>, vector<1x64xf32>
    %c0_14 = arith.constant 0 : index
    %c0_15 = arith.constant 0 : index
    %14 = vector.load %arg9[%c0_14, %c0_15] : memref<4x64xf32, #tpu.memory_space<vmem>>, vector<1x64xf32>
    %c0_16 = arith.constant 0 : index
    %c0_17 = arith.constant 0 : index
    %c0_18 = arith.constant 0 : index
    %15 = vector.load %arg10[%c0_16, %c0_17, %c0_18] : memref<4x64x128xf32, #tpu.memory_space<vmem>>, vector<1x64x128xf32>
    %16 = vector.shape_cast %15 : vector<1x64x128xf32> to vector<64x128xf32>
    %c0_19 = arith.constant 0 : index
    %c0_20 = arith.constant 0 : index
    %17 = vector.load %arg11[%c0_19, %c0_20] : memref<4x128xf32, #tpu.memory_space<vmem>>, vector<1x128xf32>
    %c0_21 = arith.constant 0 : index
    %c0_22 = arith.constant 0 : index
    %c0_23 = arith.constant 0 : index
    %18 = vector.load %arg12[%c0_21, %c0_22, %c0_23] : memref<4x128x64xf32, #tpu.memory_space<vmem>>, vector<1x128x64xf32>
    %19 = vector.shape_cast %18 : vector<1x128x64xf32> to vector<128x64xf32>
    %c0_24 = arith.constant 0 : index
    %c0_25 = arith.constant 0 : index
    %20 = vector.load %arg13[%c0_24, %c0_25] : memref<4x64xf32, #tpu.memory_space<vmem>>, vector<1x64xf32>
    %cst_26 = arith.constant dense<0.000000e+00> : vector<32xf32>
    %21 = vector.multi_reduction <add>, %12, %cst_26 [1] : vector<32x64xf32> to vector<32xf32>
    %22 = vector.shape_cast %21 : vector<32xf32> to vector<32x1xf32>
    %cst_27 = arith.constant 6.400000e+01 : f32
    %23 = vector.broadcast %cst_27 : f32 to vector<32x1xf32>
    %24 = arith.divf %22, %23 : vector<32x1xf32>
    %25 = vector.broadcast %24 : vector<32x1xf32> to vector<32x64xf32>
    %26 = arith.subf %12, %25 : vector<32x64xf32>
    %27 = arith.mulf %26, %26 : vector<32x64xf32>
    %cst_28 = arith.constant dense<0.000000e+00> : vector<32xf32>
    %28 = vector.multi_reduction <add>, %27, %cst_28 [1] : vector<32x64xf32> to vector<32xf32>
    %29 = vector.shape_cast %28 : vector<32xf32> to vector<32x1xf32>
    %cst_29 = arith.constant 6.400000e+01 : f32
    %30 = vector.broadcast %cst_29 : f32 to vector<32x1xf32>
    %31 = arith.divf %29, %30 : vector<32x1xf32>
    %cst_30 = arith.constant 9.99999974E-6 : f32
    %32 = vector.broadcast %cst_30 : f32 to vector<32x1xf32>
    %33 = arith.addf %31, %32 : vector<32x1xf32>
    %34 = math.rsqrt %33 : vector<32x1xf32>
    %35 = vector.broadcast %34 : vector<32x1xf32> to vector<32x64xf32>
    %36 = vector.broadcast %13 : vector<1x64xf32> to vector<32x64xf32>
    %37 = arith.mulf %35, %36 : vector<32x64xf32>
    %38 = arith.mulf %26, %37 : vector<32x64xf32>
    %39 = vector.broadcast %14 : vector<1x64xf32> to vector<32x64xf32>
    %40 = arith.addf %38, %39 : vector<32x64xf32>
    %cst_31 = arith.constant dense<0.000000e+00> : vector<32x128xf32>
    %41 = tpu.matmul %40, %16, %cst_31 {dimension_numbers = #tpu.dot_dimension_numbers<[1], [0], [0], [1], [0, 0, 1, 1], [], []>} : vector<32x64xf32>, vector<64x128xf32>, vector<32x128xf32> -> vector<32x128xf32>
    %42 = vector.broadcast %17 : vector<1x128xf32> to vector<32x128xf32>
    %43 = arith.addf %41, %42 : vector<32x128xf32>
    %cst_32 = arith.constant 0.000000e+00 : f32
    %44 = vector.broadcast %cst_32 : f32 to vector<32x128xf32>
    %45 = arith.maximumf %43, %44 : vector<32x128xf32>
    %cst_33 = arith.constant dense<0.000000e+00> : vector<32x64xf32>
    %46 = tpu.matmul %45, %19, %cst_33 {dimension_numbers = #tpu.dot_dimension_numbers<[1], [0], [0], [1], [0, 0, 1, 1], [], []>} : vector<32x128xf32>, vector<128x64xf32>, vector<32x64xf32> -> vector<32x64xf32>
    %47 = arith.addf %12, %46 : vector<32x64xf32>
    %48 = vector.broadcast %20 : vector<1x64xf32> to vector<32x64xf32>
    %49 = arith.addf %47, %48 : vector<32x64xf32>
    %c1 = arith.constant 1 : index
    %c0_34 = arith.constant 0 : index
    %50 = vector.load %arg8[%c1, %c0_34] : memref<4x64xf32, #tpu.memory_space<vmem>>, vector<1x64xf32>
    %c1_35 = arith.constant 1 : index
    %c0_36 = arith.constant 0 : index
    %51 = vector.load %arg9[%c1_35, %c0_36] : memref<4x64xf32, #tpu.memory_space<vmem>>, vector<1x64xf32>
    %c1_37 = arith.constant 1 : index
    %c0_38 = arith.constant 0 : index
    %c0_39 = arith.constant 0 : index
    %52 = vector.load %arg10[%c1_37, %c0_38, %c0_39] : memref<4x64x128xf32, #tpu.memory_space<vmem>>, vector<1x64x128xf32>
    %53 = vector.shape_cast %52 : vector<1x64x128xf32> to vector<64x128xf32>
    %c1_40 = arith.constant 1 : index
    %c0_41 = arith.constant 0 : index
    %54 = vector.load %arg11[%c1_40, %c0_41] : memref<4x128xf32, #tpu.memory_space<vmem>>, vector<1x128xf32>
    %c1_42 = arith.constant 1 : index
    %c0_43 = arith.constant 0 : index
    %c0_44 = arith.constant 0 : index
    %55 = vector.load %arg12[%c1_42, %c0_43, %c0_44] : memref<4x128x64xf32, #tpu.memory_space<vmem>>, vector<1x128x64xf32>
    %56 = vector.shape_cast %55 : vector<1x128x64xf32> to vector<128x64xf32>
    %c1_45 = arith.constant 1 : index
    %c0_46 = arith.constant 0 : index
    %57 = vector.load %arg13[%c1_45, %c0_46] : memref<4x64xf32, #tpu.memory_space<vmem>>, vector<1x64xf32>
    %cst_47 = arith.constant dense<0.000000e+00> : vector<32xf32>
    %58 = vector.multi_reduction <add>, %49, %cst_47 [1] : vector<32x64xf32> to vector<32xf32>
    %59 = vector.shape_cast %58 : vector<32xf32> to vector<32x1xf32>
    %cst_48 = arith.constant 6.400000e+01 : f32
    %60 = vector.broadcast %cst_48 : f32 to vector<32x1xf32>
    %61 = arith.divf %59, %60 : vector<32x1xf32>
    %62 = vector.broadcast %61 : vector<32x1xf32> to vector<32x64xf32>
    %63 = arith.subf %49, %62 : vector<32x64xf32>
    %64 = arith.mulf %63, %63 : vector<32x64xf32>
    %cst_49 = arith.constant dense<0.000000e+00> : vector<32xf32>
    %65 = vector.multi_reduction <add>, %64, %cst_49 [1] : vector<32x64xf32> to vector<32xf32>
    %66 = vector.shape_cast %65 : vector<32xf32> to vector<32x1xf32>
    %cst_50 = arith.constant 6.400000e+01 : f32
    %67 = vector.broadcast %cst_50 : f32 to vector<32x1xf32>
    %68 = arith.divf %66, %67 : vector<32x1xf32>
    %cst_51 = arith.constant 9.99999974E-6 : f32
    %69 = vector.broadcast %cst_51 : f32 to vector<32x1xf32>
    %70 = arith.addf %68, %69 : vector<32x1xf32>
    %71 = math.rsqrt %70 : vector<32x1xf32>
    %72 = vector.broadcast %71 : vector<32x1xf32> to vector<32x64xf32>
    %73 = vector.broadcast %50 : vector<1x64xf32> to vector<32x64xf32>
    %74 = arith.mulf %72, %73 : vector<32x64xf32>
    %75 = arith.mulf %63, %74 : vector<32x64xf32>
    %76 = vector.broadcast %51 : vector<1x64xf32> to vector<32x64xf32>
    %77 = arith.addf %75, %76 : vector<32x64xf32>
    %cst_52 = arith.constant dense<0.000000e+00> : vector<32x128xf32>
    %78 = tpu.matmul %77, %53, %cst_52 {dimension_numbers = #tpu.dot_dimension_numbers<[1], [0], [0], [1], [0, 0, 1, 1], [], []>} : vector<32x64xf32>, vector<64x128xf32>, vector<32x128xf32> -> vector<32x128xf32>
    %79 = vector.broadcast %54 : vector<1x128xf32> to vector<32x128xf32>
    %80 = arith.addf %78, %79 : vector<32x128xf32>
    %cst_53 = arith.constant 0.000000e+00 : f32
    %81 = vector.broadcast %cst_53 : f32 to vector<32x128xf32>
    %82 = arith.maximumf %80, %81 : vector<32x128xf32>
    %cst_54 = arith.constant dense<0.000000e+00> : vector<32x64xf32>
    %83 = tpu.matmul %82, %56, %cst_54 {dimension_numbers = #tpu.dot_dimension_numbers<[1], [0], [0], [1], [0, 0, 1, 1], [], []>} : vector<32x128xf32>, vector<128x64xf32>, vector<32x64xf32> -> vector<32x64xf32>
    %84 = arith.addf %49, %83 : vector<32x64xf32>
    %85 = vector.broadcast %57 : vector<1x64xf32> to vector<32x64xf32>
    %86 = arith.addf %84, %85 : vector<32x64xf32>
    %c2 = arith.constant 2 : index
    %c0_55 = arith.constant 0 : index
    %87 = vector.load %arg8[%c2, %c0_55] : memref<4x64xf32, #tpu.memory_space<vmem>>, vector<1x64xf32>
    %c2_56 = arith.constant 2 : index
    %c0_57 = arith.constant 0 : index
    %88 = vector.load %arg9[%c2_56, %c0_57] : memref<4x64xf32, #tpu.memory_space<vmem>>, vector<1x64xf32>
    %c2_58 = arith.constant 2 : index
    %c0_59 = arith.constant 0 : index
    %c0_60 = arith.constant 0 : index
    %89 = vector.load %arg10[%c2_58, %c0_59, %c0_60] : memref<4x64x128xf32, #tpu.memory_space<vmem>>, vector<1x64x128xf32>
    %90 = vector.shape_cast %89 : vector<1x64x128xf32> to vector<64x128xf32>
    %c2_61 = arith.constant 2 : index
    %c0_62 = arith.constant 0 : index
    %91 = vector.load %arg11[%c2_61, %c0_62] : memref<4x128xf32, #tpu.memory_space<vmem>>, vector<1x128xf32>
    %c2_63 = arith.constant 2 : index
    %c0_64 = arith.constant 0 : index
    %c0_65 = arith.constant 0 : index
    %92 = vector.load %arg12[%c2_63, %c0_64, %c0_65] : memref<4x128x64xf32, #tpu.memory_space<vmem>>, vector<1x128x64xf32>
    %93 = vector.shape_cast %92 : vector<1x128x64xf32> to vector<128x64xf32>
    %c2_66 = arith.constant 2 : index
    %c0_67 = arith.constant 0 : index
    %94 = vector.load %arg13[%c2_66, %c0_67] : memref<4x64xf32, #tpu.memory_space<vmem>>, vector<1x64xf32>
    %cst_68 = arith.constant dense<0.000000e+00> : vector<32xf32>
    %95 = vector.multi_reduction <add>, %86, %cst_68 [1] : vector<32x64xf32> to vector<32xf32>
    %96 = vector.shape_cast %95 : vector<32xf32> to vector<32x1xf32>
    %cst_69 = arith.constant 6.400000e+01 : f32
    %97 = vector.broadcast %cst_69 : f32 to vector<32x1xf32>
    %98 = arith.divf %96, %97 : vector<32x1xf32>
    %99 = vector.broadcast %98 : vector<32x1xf32> to vector<32x64xf32>
    %100 = arith.subf %86, %99 : vector<32x64xf32>
    %101 = arith.mulf %100, %100 : vector<32x64xf32>
    %cst_70 = arith.constant dense<0.000000e+00> : vector<32xf32>
    %102 = vector.multi_reduction <add>, %101, %cst_70 [1] : vector<32x64xf32> to vector<32xf32>
    %103 = vector.shape_cast %102 : vector<32xf32> to vector<32x1xf32>
    %cst_71 = arith.constant 6.400000e+01 : f32
    %104 = vector.broadcast %cst_71 : f32 to vector<32x1xf32>
    %105 = arith.divf %103, %104 : vector<32x1xf32>
    %cst_72 = arith.constant 9.99999974E-6 : f32
    %106 = vector.broadcast %cst_72 : f32 to vector<32x1xf32>
    %107 = arith.addf %105, %106 : vector<32x1xf32>
    %108 = math.rsqrt %107 : vector<32x1xf32>
    %109 = vector.broadcast %108 : vector<32x1xf32> to vector<32x64xf32>
    %110 = vector.broadcast %87 : vector<1x64xf32> to vector<32x64xf32>
    %111 = arith.mulf %109, %110 : vector<32x64xf32>
    %112 = arith.mulf %100, %111 : vector<32x64xf32>
    %113 = vector.broadcast %88 : vector<1x64xf32> to vector<32x64xf32>
    %114 = arith.addf %112, %113 : vector<32x64xf32>
    %cst_73 = arith.constant dense<0.000000e+00> : vector<32x128xf32>
    %115 = tpu.matmul %114, %90, %cst_73 {dimension_numbers = #tpu.dot_dimension_numbers<[1], [0], [0], [1], [0, 0, 1, 1], [], []>} : vector<32x64xf32>, vector<64x128xf32>, vector<32x128xf32> -> vector<32x128xf32>
    %116 = vector.broadcast %91 : vector<1x128xf32> to vector<32x128xf32>
    %117 = arith.addf %115, %116 : vector<32x128xf32>
    %cst_74 = arith.constant 0.000000e+00 : f32
    %118 = vector.broadcast %cst_74 : f32 to vector<32x128xf32>
    %119 = arith.maximumf %117, %118 : vector<32x128xf32>
    %cst_75 = arith.constant dense<0.000000e+00> : vector<32x64xf32>
    %120 = tpu.matmul %119, %93, %cst_75 {dimension_numbers = #tpu.dot_dimension_numbers<[1], [0], [0], [1], [0, 0, 1, 1], [], []>} : vector<32x128xf32>, vector<128x64xf32>, vector<32x64xf32> -> vector<32x64xf32>
    %121 = arith.addf %86, %120 : vector<32x64xf32>
    %122 = vector.broadcast %94 : vector<1x64xf32> to vector<32x64xf32>
    %123 = arith.addf %121, %122 : vector<32x64xf32>
    %c3 = arith.constant 3 : index
    %c0_76 = arith.constant 0 : index
    %124 = vector.load %arg8[%c3, %c0_76] : memref<4x64xf32, #tpu.memory_space<vmem>>, vector<1x64xf32>
    %c3_77 = arith.constant 3 : index
    %c0_78 = arith.constant 0 : index
    %125 = vector.load %arg9[%c3_77, %c0_78] : memref<4x64xf32, #tpu.memory_space<vmem>>, vector<1x64xf32>
    %c3_79 = arith.constant 3 : index
    %c0_80 = arith.constant 0 : index
    %c0_81 = arith.constant 0 : index
    %126 = vector.load %arg10[%c3_79, %c0_80, %c0_81] : memref<4x64x128xf32, #tpu.memory_space<vmem>>, vector<1x64x128xf32>
    %127 = vector.shape_cast %126 : vector<1x64x128xf32> to vector<64x128xf32>
    %c3_82 = arith.constant 3 : index
    %c0_83 = arith.constant 0 : index
    %128 = vector.load %arg11[%c3_82, %c0_83] : memref<4x128xf32, #tpu.memory_space<vmem>>, vector<1x128xf32>
    %c3_84 = arith.constant 3 : index
    %c0_85 = arith.constant 0 : index
    %c0_86 = arith.constant 0 : index
    %129 = vector.load %arg12[%c3_84, %c0_85, %c0_86] : memref<4x128x64xf32, #tpu.memory_space<vmem>>, vector<1x128x64xf32>
    %130 = vector.shape_cast %129 : vector<1x128x64xf32> to vector<128x64xf32>
    %c3_87 = arith.constant 3 : index
    %c0_88 = arith.constant 0 : index
    %131 = vector.load %arg13[%c3_87, %c0_88] : memref<4x64xf32, #tpu.memory_space<vmem>>, vector<1x64xf32>
    %cst_89 = arith.constant dense<0.000000e+00> : vector<32xf32>
    %132 = vector.multi_reduction <add>, %123, %cst_89 [1] : vector<32x64xf32> to vector<32xf32>
    %133 = vector.shape_cast %132 : vector<32xf32> to vector<32x1xf32>
    %cst_90 = arith.constant 6.400000e+01 : f32
    %134 = vector.broadcast %cst_90 : f32 to vector<32x1xf32>
    %135 = arith.divf %133, %134 : vector<32x1xf32>
    %136 = vector.broadcast %135 : vector<32x1xf32> to vector<32x64xf32>
    %137 = arith.subf %123, %136 : vector<32x64xf32>
    %138 = arith.mulf %137, %137 : vector<32x64xf32>
    %cst_91 = arith.constant dense<0.000000e+00> : vector<32xf32>
    %139 = vector.multi_reduction <add>, %138, %cst_91 [1] : vector<32x64xf32> to vector<32xf32>
    %140 = vector.shape_cast %139 : vector<32xf32> to vector<32x1xf32>
    %cst_92 = arith.constant 6.400000e+01 : f32
    %141 = vector.broadcast %cst_92 : f32 to vector<32x1xf32>
    %142 = arith.divf %140, %141 : vector<32x1xf32>
    %cst_93 = arith.constant 9.99999974E-6 : f32
    %143 = vector.broadcast %cst_93 : f32 to vector<32x1xf32>
    %144 = arith.addf %142, %143 : vector<32x1xf32>
    %145 = math.rsqrt %144 : vector<32x1xf32>
    %146 = vector.broadcast %145 : vector<32x1xf32> to vector<32x64xf32>
    %147 = vector.broadcast %124 : vector<1x64xf32> to vector<32x64xf32>
    %148 = arith.mulf %146, %147 : vector<32x64xf32>
    %149 = arith.mulf %137, %148 : vector<32x64xf32>
    %150 = vector.broadcast %125 : vector<1x64xf32> to vector<32x64xf32>
    %151 = arith.addf %149, %150 : vector<32x64xf32>
    %cst_94 = arith.constant dense<0.000000e+00> : vector<32x128xf32>
    %152 = tpu.matmul %151, %127, %cst_94 {dimension_numbers = #tpu.dot_dimension_numbers<[1], [0], [0], [1], [0, 0, 1, 1], [], []>} : vector<32x64xf32>, vector<64x128xf32>, vector<32x128xf32> -> vector<32x128xf32>
    %153 = vector.broadcast %128 : vector<1x128xf32> to vector<32x128xf32>
    %154 = arith.addf %152, %153 : vector<32x128xf32>
    %cst_95 = arith.constant 0.000000e+00 : f32
    %155 = vector.broadcast %cst_95 : f32 to vector<32x128xf32>
    %156 = arith.maximumf %154, %155 : vector<32x128xf32>
    %cst_96 = arith.constant dense<0.000000e+00> : vector<32x64xf32>
    %157 = tpu.matmul %156, %130, %cst_96 {dimension_numbers = #tpu.dot_dimension_numbers<[1], [0], [0], [1], [0, 0, 1, 1], [], []>} : vector<32x128xf32>, vector<128x64xf32>, vector<32x64xf32> -> vector<32x64xf32>
    %158 = arith.addf %123, %157 : vector<32x64xf32>
    %159 = vector.broadcast %131 : vector<1x64xf32> to vector<32x64xf32>
    %160 = arith.addf %158, %159 : vector<32x64xf32>
    %cst_97 = arith.constant dense<0xFF800000> : vector<32xf32>
    %161 = vector.multi_reduction <maximumf>, %160, %cst_97 [1] : vector<32x64xf32> to vector<32xf32>
    %162 = vector.shape_cast %161 : vector<32xf32> to vector<32x1xf32>
    %c0_98 = arith.constant 0 : index
    %c0_99 = arith.constant 0 : index
    %163 = vector.load %arg6[%c0_98, %c0_99] : memref<1x32xf32, #tpu.memory_space<vmem>>, vector<1x32xf32>
    %c0_100 = arith.constant 0 : index
    %c0_101 = arith.constant 0 : index
    %164 = vector.load %arg7[%c0_100, %c0_101] : memref<32x32xf32, #tpu.memory_space<vmem>>, vector<32x32xf32>
    %165 = vector.broadcast %162 : vector<32x1xf32> to vector<32x32xf32>
    %166 = arith.mulf %165, %164 : vector<32x32xf32>
    %cst_102 = arith.constant dense<0.000000e+00> : vector<1x32xf32>
    %167 = tpu.matmul %163, %166, %cst_102 {dimension_numbers = #tpu.dot_dimension_numbers<[1], [0], [0], [1], [0, 0, 1, 1], [], []>} : vector<1x32xf32>, vector<32x32xf32>, vector<1x32xf32> -> vector<1x32xf32>
    %c0_103 = arith.constant 0 : index
    %c0_104 = arith.constant 0 : index
    %168 = vector.load %arg14[%c0_103, %c0_104] : memref<4x32xf32, #tpu.memory_space<vmem>>, vector<1x32xf32>
    %c0_105 = arith.constant 0 : index
    %c0_106 = arith.constant 0 : index
    %169 = vector.load %arg15[%c0_105, %c0_106] : memref<4x32xf32, #tpu.memory_space<vmem>>, vector<1x32xf32>
    %c0_107 = arith.constant 0 : index
    %c0_108 = arith.constant 0 : index
    %c0_109 = arith.constant 0 : index
    %170 = vector.load %arg16[%c0_107, %c0_108, %c0_109] : memref<4x32x64xf32, #tpu.memory_space<vmem>>, vector<1x32x64xf32>
    %171 = vector.shape_cast %170 : vector<1x32x64xf32> to vector<32x64xf32>
    %c0_110 = arith.constant 0 : index
    %c0_111 = arith.constant 0 : index
    %172 = vector.load %arg17[%c0_110, %c0_111] : memref<4x64xf32, #tpu.memory_space<vmem>>, vector<1x64xf32>
    %c0_112 = arith.constant 0 : index
    %c0_113 = arith.constant 0 : index
    %c0_114 = arith.constant 0 : index
    %173 = vector.load %arg18[%c0_112, %c0_113, %c0_114] : memref<4x64x32xf32, #tpu.memory_space<vmem>>, vector<1x64x32xf32>
    %174 = vector.shape_cast %173 : vector<1x64x32xf32> to vector<64x32xf32>
    %c0_115 = arith.constant 0 : index
    %c0_116 = arith.constant 0 : index
    %175 = vector.load %arg19[%c0_115, %c0_116] : memref<4x32xf32, #tpu.memory_space<vmem>>, vector<1x32xf32>
    %cst_117 = arith.constant dense<0.000000e+00> : vector<1xf32>
    %176 = vector.multi_reduction <add>, %167, %cst_117 [1] : vector<1x32xf32> to vector<1xf32>
    %177 = vector.shape_cast %176 : vector<1xf32> to vector<1x1xf32>
    %cst_118 = arith.constant 3.200000e+01 : f32
    %178 = vector.broadcast %cst_118 : f32 to vector<1x1xf32>
    %179 = arith.divf %177, %178 : vector<1x1xf32>
    %180 = vector.broadcast %179 : vector<1x1xf32> to vector<1x32xf32>
    %181 = arith.subf %167, %180 : vector<1x32xf32>
    %182 = arith.mulf %181, %181 : vector<1x32xf32>
    %cst_119 = arith.constant dense<0.000000e+00> : vector<1xf32>
    %183 = vector.multi_reduction <add>, %182, %cst_119 [1] : vector<1x32xf32> to vector<1xf32>
    %184 = vector.shape_cast %183 : vector<1xf32> to vector<1x1xf32>
    %cst_120 = arith.constant 3.200000e+01 : f32
    %185 = vector.broadcast %cst_120 : f32 to vector<1x1xf32>
    %186 = arith.divf %184, %185 : vector<1x1xf32>
    %cst_121 = arith.constant 9.99999974E-6 : f32
    %187 = vector.broadcast %cst_121 : f32 to vector<1x1xf32>
    %188 = arith.addf %186, %187 : vector<1x1xf32>
    %189 = math.rsqrt %188 : vector<1x1xf32>
    %190 = vector.broadcast %189 : vector<1x1xf32> to vector<1x32xf32>
    %191 = arith.mulf %190, %168 : vector<1x32xf32>
    %192 = arith.mulf %181, %191 : vector<1x32xf32>
    %193 = arith.addf %192, %169 : vector<1x32xf32>
    %cst_122 = arith.constant dense<0.000000e+00> : vector<1x64xf32>
    %194 = tpu.matmul %193, %171, %cst_122 {dimension_numbers = #tpu.dot_dimension_numbers<[1], [0], [0], [1], [0, 0, 1, 1], [], []>} : vector<1x32xf32>, vector<32x64xf32>, vector<1x64xf32> -> vector<1x64xf32>
    %195 = arith.addf %194, %172 : vector<1x64xf32>
    %cst_123 = arith.constant 0.000000e+00 : f32
    %196 = vector.broadcast %cst_123 : f32 to vector<1x64xf32>
    %197 = arith.maximumf %195, %196 : vector<1x64xf32>
    %cst_124 = arith.constant dense<0.000000e+00> : vector<1x32xf32>
    %198 = tpu.matmul %197, %174, %cst_124 {dimension_numbers = #tpu.dot_dimension_numbers<[1], [0], [0], [1], [0, 0, 1, 1], [], []>} : vector<1x64xf32>, vector<64x32xf32>, vector<1x32xf32> -> vector<1x32xf32>
    %199 = arith.addf %167, %198 : vector<1x32xf32>
    %200 = arith.addf %199, %175 : vector<1x32xf32>
    %c1_125 = arith.constant 1 : index
    %c0_126 = arith.constant 0 : index
    %201 = vector.load %arg14[%c1_125, %c0_126] : memref<4x32xf32, #tpu.memory_space<vmem>>, vector<1x32xf32>
    %c1_127 = arith.constant 1 : index
    %c0_128 = arith.constant 0 : index
    %202 = vector.load %arg15[%c1_127, %c0_128] : memref<4x32xf32, #tpu.memory_space<vmem>>, vector<1x32xf32>
    %c1_129 = arith.constant 1 : index
    %c0_130 = arith.constant 0 : index
    %c0_131 = arith.constant 0 : index
    %203 = vector.load %arg16[%c1_129, %c0_130, %c0_131] : memref<4x32x64xf32, #tpu.memory_space<vmem>>, vector<1x32x64xf32>
    %204 = vector.shape_cast %203 : vector<1x32x64xf32> to vector<32x64xf32>
    %c1_132 = arith.constant 1 : index
    %c0_133 = arith.constant 0 : index
    %205 = vector.load %arg17[%c1_132, %c0_133] : memref<4x64xf32, #tpu.memory_space<vmem>>, vector<1x64xf32>
    %c1_134 = arith.constant 1 : index
    %c0_135 = arith.constant 0 : index
    %c0_136 = arith.constant 0 : index
    %206 = vector.load %arg18[%c1_134, %c0_135, %c0_136] : memref<4x64x32xf32, #tpu.memory_space<vmem>>, vector<1x64x32xf32>
    %207 = vector.shape_cast %206 : vector<1x64x32xf32> to vector<64x32xf32>
    %c1_137 = arith.constant 1 : index
    %c0_138 = arith.constant 0 : index
    %208 = vector.load %arg19[%c1_137, %c0_138] : memref<4x32xf32, #tpu.memory_space<vmem>>, vector<1x32xf32>
    %cst_139 = arith.constant dense<0.000000e+00> : vector<1xf32>
    %209 = vector.multi_reduction <add>, %200, %cst_139 [1] : vector<1x32xf32> to vector<1xf32>
    %210 = vector.shape_cast %209 : vector<1xf32> to vector<1x1xf32>
    %cst_140 = arith.constant 3.200000e+01 : f32
    %211 = vector.broadcast %cst_140 : f32 to vector<1x1xf32>
    %212 = arith.divf %210, %211 : vector<1x1xf32>
    %213 = vector.broadcast %212 : vector<1x1xf32> to vector<1x32xf32>
    %214 = arith.subf %200, %213 : vector<1x32xf32>
    %215 = arith.mulf %214, %214 : vector<1x32xf32>
    %cst_141 = arith.constant dense<0.000000e+00> : vector<1xf32>
    %216 = vector.multi_reduction <add>, %215, %cst_141 [1] : vector<1x32xf32> to vector<1xf32>
    %217 = vector.shape_cast %216 : vector<1xf32> to vector<1x1xf32>
    %cst_142 = arith.constant 3.200000e+01 : f32
    %218 = vector.broadcast %cst_142 : f32 to vector<1x1xf32>
    %219 = arith.divf %217, %218 : vector<1x1xf32>
    %cst_143 = arith.constant 9.99999974E-6 : f32
    %220 = vector.broadcast %cst_143 : f32 to vector<1x1xf32>
    %221 = arith.addf %219, %220 : vector<1x1xf32>
    %222 = math.rsqrt %221 : vector<1x1xf32>
    %223 = vector.broadcast %222 : vector<1x1xf32> to vector<1x32xf32>
    %224 = arith.mulf %223, %201 : vector<1x32xf32>
    %225 = arith.mulf %214, %224 : vector<1x32xf32>
    %226 = arith.addf %225, %202 : vector<1x32xf32>
    %cst_144 = arith.constant dense<0.000000e+00> : vector<1x64xf32>
    %227 = tpu.matmul %226, %204, %cst_144 {dimension_numbers = #tpu.dot_dimension_numbers<[1], [0], [0], [1], [0, 0, 1, 1], [], []>} : vector<1x32xf32>, vector<32x64xf32>, vector<1x64xf32> -> vector<1x64xf32>
    %228 = arith.addf %227, %205 : vector<1x64xf32>
    %cst_145 = arith.constant 0.000000e+00 : f32
    %229 = vector.broadcast %cst_145 : f32 to vector<1x64xf32>
    %230 = arith.maximumf %228, %229 : vector<1x64xf32>
    %cst_146 = arith.constant dense<0.000000e+00> : vector<1x32xf32>
    %231 = tpu.matmul %230, %207, %cst_146 {dimension_numbers = #tpu.dot_dimension_numbers<[1], [0], [0], [1], [0, 0, 1, 1], [], []>} : vector<1x64xf32>, vector<64x32xf32>, vector<1x32xf32> -> vector<1x32xf32>
    %232 = arith.addf %200, %231 : vector<1x32xf32>
    %233 = arith.addf %232, %208 : vector<1x32xf32>
    %c2_147 = arith.constant 2 : index
    %c0_148 = arith.constant 0 : index
    %234 = vector.load %arg14[%c2_147, %c0_148] : memref<4x32xf32, #tpu.memory_space<vmem>>, vector<1x32xf32>
    %c2_149 = arith.constant 2 : index
    %c0_150 = arith.constant 0 : index
    %235 = vector.load %arg15[%c2_149, %c0_150] : memref<4x32xf32, #tpu.memory_space<vmem>>, vector<1x32xf32>
    %c2_151 = arith.constant 2 : index
    %c0_152 = arith.constant 0 : index
    %c0_153 = arith.constant 0 : index
    %236 = vector.load %arg16[%c2_151, %c0_152, %c0_153] : memref<4x32x64xf32, #tpu.memory_space<vmem>>, vector<1x32x64xf32>
    %237 = vector.shape_cast %236 : vector<1x32x64xf32> to vector<32x64xf32>
    %c2_154 = arith.constant 2 : index
    %c0_155 = arith.constant 0 : index
    %238 = vector.load %arg17[%c2_154, %c0_155] : memref<4x64xf32, #tpu.memory_space<vmem>>, vector<1x64xf32>
    %c2_156 = arith.constant 2 : index
    %c0_157 = arith.constant 0 : index
    %c0_158 = arith.constant 0 : index
    %239 = vector.load %arg18[%c2_156, %c0_157, %c0_158] : memref<4x64x32xf32, #tpu.memory_space<vmem>>, vector<1x64x32xf32>
    %240 = vector.shape_cast %239 : vector<1x64x32xf32> to vector<64x32xf32>
    %c2_159 = arith.constant 2 : index
    %c0_160 = arith.constant 0 : index
    %241 = vector.load %arg19[%c2_159, %c0_160] : memref<4x32xf32, #tpu.memory_space<vmem>>, vector<1x32xf32>
    %cst_161 = arith.constant dense<0.000000e+00> : vector<1xf32>
    %242 = vector.multi_reduction <add>, %233, %cst_161 [1] : vector<1x32xf32> to vector<1xf32>
    %243 = vector.shape_cast %242 : vector<1xf32> to vector<1x1xf32>
    %cst_162 = arith.constant 3.200000e+01 : f32
    %244 = vector.broadcast %cst_162 : f32 to vector<1x1xf32>
    %245 = arith.divf %243, %244 : vector<1x1xf32>
    %246 = vector.broadcast %245 : vector<1x1xf32> to vector<1x32xf32>
    %247 = arith.subf %233, %246 : vector<1x32xf32>
    %248 = arith.mulf %247, %247 : vector<1x32xf32>
    %cst_163 = arith.constant dense<0.000000e+00> : vector<1xf32>
    %249 = vector.multi_reduction <add>, %248, %cst_163 [1] : vector<1x32xf32> to vector<1xf32>
    %250 = vector.shape_cast %249 : vector<1xf32> to vector<1x1xf32>
    %cst_164 = arith.constant 3.200000e+01 : f32
    %251 = vector.broadcast %cst_164 : f32 to vector<1x1xf32>
    %252 = arith.divf %250, %251 : vector<1x1xf32>
    %cst_165 = arith.constant 9.99999974E-6 : f32
    %253 = vector.broadcast %cst_165 : f32 to vector<1x1xf32>
    %254 = arith.addf %252, %253 : vector<1x1xf32>
    %255 = math.rsqrt %254 : vector<1x1xf32>
    %256 = vector.broadcast %255 : vector<1x1xf32> to vector<1x32xf32>
    %257 = arith.mulf %256, %234 : vector<1x32xf32>
    %258 = arith.mulf %247, %257 : vector<1x32xf32>
    %259 = arith.addf %258, %235 : vector<1x32xf32>
    %cst_166 = arith.constant dense<0.000000e+00> : vector<1x64xf32>
    %260 = tpu.matmul %259, %237, %cst_166 {dimension_numbers = #tpu.dot_dimension_numbers<[1], [0], [0], [1], [0, 0, 1, 1], [], []>} : vector<1x32xf32>, vector<32x64xf32>, vector<1x64xf32> -> vector<1x64xf32>
    %261 = arith.addf %260, %238 : vector<1x64xf32>
    %cst_167 = arith.constant 0.000000e+00 : f32
    %262 = vector.broadcast %cst_167 : f32 to vector<1x64xf32>
    %263 = arith.maximumf %261, %262 : vector<1x64xf32>
    %cst_168 = arith.constant dense<0.000000e+00> : vector<1x32xf32>
    %264 = tpu.matmul %263, %240, %cst_168 {dimension_numbers = #tpu.dot_dimension_numbers<[1], [0], [0], [1], [0, 0, 1, 1], [], []>} : vector<1x64xf32>, vector<64x32xf32>, vector<1x32xf32> -> vector<1x32xf32>
    %265 = arith.addf %233, %264 : vector<1x32xf32>
    %266 = arith.addf %265, %241 : vector<1x32xf32>
    %c3_169 = arith.constant 3 : index
    %c0_170 = arith.constant 0 : index
    %267 = vector.load %arg14[%c3_169, %c0_170] : memref<4x32xf32, #tpu.memory_space<vmem>>, vector<1x32xf32>
    %c3_171 = arith.constant 3 : index
    %c0_172 = arith.constant 0 : index
    %268 = vector.load %arg15[%c3_171, %c0_172] : memref<4x32xf32, #tpu.memory_space<vmem>>, vector<1x32xf32>
    %c3_173 = arith.constant 3 : index
    %c0_174 = arith.constant 0 : index
    %c0_175 = arith.constant 0 : index
    %269 = vector.load %arg16[%c3_173, %c0_174, %c0_175] : memref<4x32x64xf32, #tpu.memory_space<vmem>>, vector<1x32x64xf32>
    %270 = vector.shape_cast %269 : vector<1x32x64xf32> to vector<32x64xf32>
    %c3_176 = arith.constant 3 : index
    %c0_177 = arith.constant 0 : index
    %271 = vector.load %arg17[%c3_176, %c0_177] : memref<4x64xf32, #tpu.memory_space<vmem>>, vector<1x64xf32>
    %c3_178 = arith.constant 3 : index
    %c0_179 = arith.constant 0 : index
    %c0_180 = arith.constant 0 : index
    %272 = vector.load %arg18[%c3_178, %c0_179, %c0_180] : memref<4x64x32xf32, #tpu.memory_space<vmem>>, vector<1x64x32xf32>
    %273 = vector.shape_cast %272 : vector<1x64x32xf32> to vector<64x32xf32>
    %c3_181 = arith.constant 3 : index
    %c0_182 = arith.constant 0 : index
    %274 = vector.load %arg19[%c3_181, %c0_182] : memref<4x32xf32, #tpu.memory_space<vmem>>, vector<1x32xf32>
    %cst_183 = arith.constant dense<0.000000e+00> : vector<1xf32>
    %275 = vector.multi_reduction <add>, %266, %cst_183 [1] : vector<1x32xf32> to vector<1xf32>
    %276 = vector.shape_cast %275 : vector<1xf32> to vector<1x1xf32>
    %cst_184 = arith.constant 3.200000e+01 : f32
    %277 = vector.broadcast %cst_184 : f32 to vector<1x1xf32>
    %278 = arith.divf %276, %277 : vector<1x1xf32>
    %279 = vector.broadcast %278 : vector<1x1xf32> to vector<1x32xf32>
    %280 = arith.subf %266, %279 : vector<1x32xf32>
    %281 = arith.mulf %280, %280 : vector<1x32xf32>
    %cst_185 = arith.constant dense<0.000000e+00> : vector<1xf32>
    %282 = vector.multi_reduction <add>, %281, %cst_185 [1] : vector<1x32xf32> to vector<1xf32>
    %283 = vector.shape_cast %282 : vector<1xf32> to vector<1x1xf32>
    %cst_186 = arith.constant 3.200000e+01 : f32
    %284 = vector.broadcast %cst_186 : f32 to vector<1x1xf32>
    %285 = arith.divf %283, %284 : vector<1x1xf32>
    %cst_187 = arith.constant 9.99999974E-6 : f32
    %286 = vector.broadcast %cst_187 : f32 to vector<1x1xf32>
    %287 = arith.addf %285, %286 : vector<1x1xf32>
    %288 = math.rsqrt %287 : vector<1x1xf32>
    %289 = vector.broadcast %288 : vector<1x1xf32> to vector<1x32xf32>
    %290 = arith.mulf %289, %267 : vector<1x32xf32>
    %291 = arith.mulf %280, %290 : vector<1x32xf32>
    %292 = arith.addf %291, %268 : vector<1x32xf32>
    %cst_188 = arith.constant dense<0.000000e+00> : vector<1x64xf32>
    %293 = tpu.matmul %292, %270, %cst_188 {dimension_numbers = #tpu.dot_dimension_numbers<[1], [0], [0], [1], [0, 0, 1, 1], [], []>} : vector<1x32xf32>, vector<32x64xf32>, vector<1x64xf32> -> vector<1x64xf32>
    %294 = arith.addf %293, %271 : vector<1x64xf32>
    %cst_189 = arith.constant 0.000000e+00 : f32
    %295 = vector.broadcast %cst_189 : f32 to vector<1x64xf32>
    %296 = arith.maximumf %294, %295 : vector<1x64xf32>
    %cst_190 = arith.constant dense<0.000000e+00> : vector<1x32xf32>
    %297 = tpu.matmul %296, %273, %cst_190 {dimension_numbers = #tpu.dot_dimension_numbers<[1], [0], [0], [1], [0, 0, 1, 1], [], []>} : vector<1x64xf32>, vector<64x32xf32>, vector<1x32xf32> -> vector<1x32xf32>
    %298 = arith.addf %266, %297 : vector<1x32xf32>
    %299 = arith.addf %298, %274 : vector<1x32xf32>
    %c0_191 = arith.constant 0 : index
    %c0_192 = arith.constant 0 : index
    %300 = vector.load %arg20[%c0_191, %c0_192] : memref<32x3xf32, #tpu.memory_space<vmem>>, vector<32x3xf32>
    %cst_193 = arith.constant dense<0.000000e+00> : vector<1x3xf32>
    %301 = tpu.matmul %299, %300, %cst_193 {dimension_numbers = #tpu.dot_dimension_numbers<[1], [0], [0], [1], [0, 0, 1, 1], [], []>} : vector<1x32xf32>, vector<32x3xf32>, vector<1x3xf32> -> vector<1x3xf32>
    %c0_194 = arith.constant 0 : index
    %c0_195 = arith.constant 0 : index
    %302 = vector.load %arg21[%c0_194, %c0_195] : memref<1x3xf32, #tpu.memory_space<vmem>>, vector<1x3xf32>
    %303 = arith.addf %301, %302 : vector<1x3xf32>
    %c0_196 = arith.constant 0 : index
    %c0_197 = arith.constant 0 : index
    %304 = vector.load %arg22[%c0_196, %c0_197] : memref<1x3xf32, #tpu.memory_space<vmem>>, vector<1x3xf32>
    %305 = arith.addf %303, %304 : vector<1x3xf32>
    %cst_198 = arith.constant dense<0xFF800000> : vector<1xf32>
    %306 = vector.multi_reduction <maximumf>, %305, %cst_198 [1] : vector<1x3xf32> to vector<1xf32>
    %307 = vector.shape_cast %306 : vector<1xf32> to vector<1x1xf32>
    %308 = vector.broadcast %307 : vector<1x1xf32> to vector<1x3xf32>
    %309 = arith.subf %305, %308 : vector<1x3xf32>
    %310 = math.exp %309 : vector<1x3xf32>
    %cst_199 = arith.constant dense<0.000000e+00> : vector<1xf32>
    %311 = vector.multi_reduction <add>, %310, %cst_199 [1] : vector<1x3xf32> to vector<1xf32>
    %312 = vector.shape_cast %311 : vector<1xf32> to vector<1x1xf32>
    %313 = math.log %312 : vector<1x1xf32>
    %314 = vector.broadcast %313 : vector<1x1xf32> to vector<1x3xf32>
    %315 = arith.subf %309, %314 : vector<1x3xf32>
    %c0_200 = arith.constant 0 : index
    %c0_201 = arith.constant 0 : index
    %c0_202 = arith.constant 0 : index
    %316 = vector.load %arg23[%c0_200, %c0_201, %c0_202] : memref<1x1x3xf32, #tpu.memory_space<vmem>>, vector<1x1x3xf32>
    %317 = vector.shape_cast %316 : vector<1x1x3xf32> to vector<1x3xf32>
    %318 = vector.shape_cast %315 : vector<1x3xf32> to vector<1x1x3xf32>
    tpu.vector_store %arg23[%c0_200, %c0_201, %c0_202], %318 {strides = array<i32>} : memref<1x1x3xf32, #tpu.memory_space<vmem>>, vector<1x1x3xf32>,
    %c0_203 = arith.constant 0 : index
    %c0_204 = arith.constant 0 : index
    %c0_205 = arith.constant 0 : index
    %319 = vector.load %arg24[%c0_203, %c0_204, %c0_205] : memref<1x1x32xf32, #tpu.memory_space<vmem>>, vector<1x1x32xf32>
    %320 = vector.shape_cast %319 : vector<1x1x32xf32> to vector<1x32xf32>
    %321 = vector.shape_cast %299 : vector<1x32xf32> to vector<1x1x32xf32>
    tpu.vector_store %arg24[%c0_203, %c0_204, %c0_205], %321 {strides = array<i32>} : memref<1x1x32xf32, #tpu.memory_space<vmem>>, vector<1x1x32xf32>,
    return
  }
  func.func @transform_0(%arg0: i32) -> (i32, i32, i32) {
    %c0_i32 = arith.constant 0 : i32
    %c0_i32_0 = arith.constant 0 : i32
    %c0_i32_1 = arith.constant 0 : i32
    return %arg0, %c0_i32, %c0_i32_0 : i32, i32, i32
  }
  func.func @transform_1(%arg0: i32) -> (i32, i32) {
    %c0_i32 = arith.constant 0 : i32
    %c0_i32_0 = arith.constant 0 : i32
    %c0_i32_1 = arith.constant 0 : i32
    return %c0_i32, %c0_i32_0 : i32, i32
  }
  func.func @transform_2(%arg0: i32) -> (i32, i32) {
    %c0_i32 = arith.constant 0 : i32
    %c0_i32_0 = arith.constant 0 : i32
    %c0_i32_1 = arith.constant 0 : i32
    return %c0_i32, %c0_i32_0 : i32, i32
  }
  func.func @transform_3(%arg0: i32) -> (i32, i32) {
    %c0_i32 = arith.constant 0 : i32
    %c0_i32_0 = arith.constant 0 : i32
    %c0_i32_1 = arith.constant 0 : i32
    return %c0_i32, %c0_i32_0 : i32, i32
  }
  func.func @transform_4(%arg0: i32) -> (i32, i32) {
    %c0_i32 = arith.constant 0 : i32
    %c0_i32_0 = arith.constant 0 : i32
    %c0_i32_1 = arith.constant 0 : i32
    return %c0_i32, %c0_i32_0 : i32, i32
  }
  func.func @transform_5(%arg0: i32) -> (i32, i32) {
    %c0_i32 = arith.constant 0 : i32
    %c0_i32_0 = arith.constant 0 : i32
    %c0_i32_1 = arith.constant 0 : i32
    return %c0_i32, %c0_i32_0 : i32, i32
  }
  func.func @transform_6(%arg0: i32) -> (i32, i32) {
    %c0_i32 = arith.constant 0 : i32
    %c0_i32_0 = arith.constant 0 : i32
    %c0_i32_1 = arith.constant 0 : i32
    return %c0_i32, %c0_i32_0 : i32, i32
  }
  func.func @transform_7(%arg0: i32) -> (i32, i32) {
    %c0_i32 = arith.constant 0 : i32
    %c0_i32_0 = arith.constant 0 : i32
    %c0_i32_1 = arith.constant 0 : i32
    return %c0_i32, %c0_i32_0 : i32, i32
  }
  func.func @transform_8(%arg0: i32) -> (i32, i32) {
    %c0_i32 = arith.constant 0 : i32
    %c0_i32_0 = arith.constant 0 : i32
    %c0_i32_1 = arith.constant 0 : i32
    return %c0_i32, %c0_i32_0 : i32, i32
  }
  func.func @transform_9(%arg0: i32) -> (i32, i32, i32) {
    %c0_i32 = arith.constant 0 : i32
    %c0_i32_0 = arith.constant 0 : i32
    %c0_i32_1 = arith.constant 0 : i32
    %c0_i32_2 = arith.constant 0 : i32
    return %c0_i32, %c0_i32_0, %c0_i32_1 : i32, i32, i32
  }
  func.func @transform_10(%arg0: i32) -> (i32, i32) {
    %c0_i32 = arith.constant 0 : i32
    %c0_i32_0 = arith.constant 0 : i32
    %c0_i32_1 = arith.constant 0 : i32
    return %c0_i32, %c0_i32_0 : i32, i32
  }
  func.func @transform_11(%arg0: i32) -> (i32, i32, i32) {
    %c0_i32 = arith.constant 0 : i32
    %c0_i32_0 = arith.constant 0 : i32
    %c0_i32_1 = arith.constant 0 : i32
    %c0_i32_2 = arith.constant 0 : i32
    return %c0_i32, %c0_i32_0, %c0_i32_1 : i32, i32, i32
  }
  func.func @transform_12(%arg0: i32) -> (i32, i32) {
    %c0_i32 = arith.constant 0 : i32
    %c0_i32_0 = arith.constant 0 : i32
    %c0_i32_1 = arith.constant 0 : i32
    return %c0_i32, %c0_i32_0 : i32, i32
  }
  func.func @transform_13(%arg0: i32) -> (i32, i32) {
    %c0_i32 = arith.constant 0 : i32
    %c0_i32_0 = arith.constant 0 : i32
    %c0_i32_1 = arith.constant 0 : i32
    return %c0_i32, %c0_i32_0 : i32, i32
  }
  func.func @transform_14(%arg0: i32) -> (i32, i32) {
    %c0_i32 = arith.constant 0 : i32
    %c0_i32_0 = arith.constant 0 : i32
    %c0_i32_1 = arith.constant 0 : i32
    return %c0_i32, %c0_i32_0 : i32, i32
  }
  func.func @transform_15(%arg0: i32) -> (i32, i32, i32) {
    %c0_i32 = arith.constant 0 : i32
    %c0_i32_0 = arith.constant 0 : i32
    %c0_i32_1 = arith.constant 0 : i32
    %c0_i32_2 = arith.constant 0 : i32
    return %c0_i32, %c0_i32_0, %c0_i32_1 : i32, i32, i32
  }
  func.func @transform_16(%arg0: i32) -> (i32, i32) {
    %c0_i32 = arith.constant 0 : i32
    %c0_i32_0 = arith.constant 0 : i32
    %c0_i32_1 = arith.constant 0 : i32
    return %c0_i32, %c0_i32_0 : i32, i32
  }
  func.func @transform_17(%arg0: i32) -> (i32, i32, i32) {
    %c0_i32 = arith.constant 0 : i32
    %c0_i32_0 = arith.constant 0 : i32
    %c0_i32_1 = arith.constant 0 : i32
    %c0_i32_2 = arith.constant 0 : i32
    return %c0_i32, %c0_i32_0, %c0_i32_1 : i32, i32, i32
  }
  func.func @transform_18(%arg0: i32) -> (i32, i32) {
    %c0_i32 = arith.constant 0 : i32
    %c0_i32_0 = arith.constant 0 : i32
    %c0_i32_1 = arith.constant 0 : i32
    return %c0_i32, %c0_i32_0 : i32, i32
  }
  func.func @transform_19(%arg0: i32) -> (i32, i32) {
    %c0_i32 = arith.constant 0 : i32
    %c0_i32_0 = arith.constant 0 : i32
    %c0_i32_1 = arith.constant 0 : i32
    return %c0_i32, %c0_i32_0 : i32, i32
  }
  func.func @transform_20(%arg0: i32) -> (i32, i32) {
    %c0_i32 = arith.constant 0 : i32
    %c0_i32_0 = arith.constant 0 : i32
    %c0_i32_1 = arith.constant 0 : i32
    return %c0_i32, %c0_i32_0 : i32, i32
  }
  func.func @transform_21(%arg0: i32) -> (i32, i32) {
    %c0_i32 = arith.constant 0 : i32
    %c0_i32_0 = arith.constant 0 : i32
    %c0_i32_1 = arith.constant 0 : i32
    return %c0_i32, %c0_i32_0 : i32, i32
  }
  func.func @transform_22(%arg0: i32) -> (i32, i32, i32) {
    %c0_i32 = arith.constant 0 : i32
    %c0_i32_0 = arith.constant 0 : i32
    %c0_i32_1 = arith.constant 0 : i32
    return %arg0, %c0_i32, %c0_i32_0 : i32, i32, i32
  }
  func.func @transform_23(%arg0: i32) -> (i32, i32, i32) {
    %c0_i32 = arith.constant 0 : i32
    %c0_i32_0 = arith.constant 0 : i32
    %c0_i32_1 = arith.constant 0 : i32
    return %arg0, %c0_i32, %c0_i32_0 : i32, i32, i32
  }
}

</mosaic_0001>

<bundles_post_ra>
// kernel: tpu_custom_call.1
= control target key start
LH: loop header
LB: loop body
LE: loop exit
PB: predicated region body
PF: predicated region fallthrough
CT: control target
= control target key end

     0   :  { %s5605_s0 = inlined_call_operand.vmem [shape: f32[2,36,64], index: 0, kind: input, shape index: {}]   ;;  %s5606_s1 = inlined_call_operand.vmem [shape: f32[24,36], index: 1, kind: input, shape index: {}]   ;;  %s5607_s2 = inlined_call_operand.vmem [shape: f32[24,1], index: 2, kind: input, shape index: {}]   ;;  %s5608_s3 = inlined_call_operand.vmem [shape: f32[32,24], index: 3, kind: input, shape index: {}]   ;;  %s5609_s4 = inlined_call_operand.vmem [shape: f32[32,64], index: 4, kind: input, shape index: {}]   ;;  %s5610_s5 = inlined_call_operand.vmem [shape: f32[1,32], index: 5, kind: input, shape index: {}]   ;;  %s5611_s6 = inlined_call_operand.vmem [shape: f32[32,32], index: 6, kind: input, shape index: {}]   ;;  %s5612_s7 = inlined_call_operand.vmem [shape: f32[4,64], index: 7, kind: input, shape index: {}]   ;;  %s5613_s8 = inlined_call_operand.vmem [shape: f32[4,64], index: 8, kind: input, shape index: {}]   ;;  %s5614_s9 = inlined_call_operand.vmem [shape: f32[4,64,128], index: 9, kind: input, shape index: {}]   ;;  %s5615_s10 = inlined_call_operand.vmem [shape: f32[4,128], index: 10, kind: input, shape index: {}]   ;;  %s5616_s11 = inlined_call_operand.vmem [shape: f32[4,128,64], index: 11, kind: input, shape index: {}]   ;;  %s5617_s12 = inlined_call_operand.vmem [shape: f32[4,64], index: 12, kind: input, shape index: {}]   ;;  %s5618_s13 = inlined_call_operand.vmem [shape: f32[4,32], index: 13, kind: input, shape index: {}]   ;;  %s5619_s14 = inlined_call_operand.vmem [shape: f32[4,32], index: 14, kind: input, shape index: {}]   ;;  %s5620_s15 = inlined_call_operand.vmem [shape: f32[4,32,64], index: 15, kind: input, shape index: {}]   ;;  %s5621_s16 = inlined_call_operand.vmem [shape: f32[4,64], index: 16, kind: input, shape index: {}]   ;;  %s5622_s17 = inlined_call_operand.vmem [shape: f32[4,64,32], index: 17, kind: input, shape index: {}]   ;;  %s5623_s18 = inlined_call_operand.vmem [shape: f32[4,32], index: 18, kind: input, shape index: {}]   ;;  %s5624_s19 = inlined_call_operand.vmem [shape: f32[32,3], index: 19, kind: input, shape index: {}]   ;;  %s5625_s20 = inlined_call_operand.vmem [shape: f32[1,3], index: 20, kind: input, shape index: {}]   ;;  %s5626_s21 = inlined_call_operand.vmem [shape: f32[1,3], index: 21, kind: input, shape index: {}]   ;;  %s5627_s22 = inlined_call_operand.hbm [shape: f32[2,1,3], index: 22, kind: output, shape index: {0}]   ;;  %s5628_s23 = inlined_call_operand.hbm [shape: f32[2,1,32], index: 23, kind: output, shape index: {1}]  }
   0x1   :  { %5647 = sst [smem:[#allocation14_spill]] %s5605_s0 }
   0x2   :  { %5648 = sst [smem:[#allocation15_spill]] %s5606_s1 }
   0x3   :  { %5649 = sst [smem:[#allocation16_spill]] %s5607_s2 }
   0x4   :  { %5650 = sst [smem:[#allocation17_spill]] %s5608_s3 }
   0x5   :  { %5651 = sst [smem:[#allocation18_spill]] %s5609_s4 }
   0x6   :  { %5652 = sst [smem:[#allocation19_spill]] %s5610_s5 }
   0x7   :  { %5653 = sst [smem:[#allocation20_spill]] %s5611_s6 }
   0x8   :  { %5654 = sst [smem:[#allocation21_spill]] %s5612_s7 }
   0x9   :  { %5655 = sst [smem:[#allocation22_spill]] %s5613_s8 }
   0xa   :  { %29 = vsyncpa [#allocation3], 0 }
   0xb   :  { %31 = vsyncpa [#allocation3 + $0x1], 0 }
   0xc   :  { %32 = vsyncpa [#allocation5], 0 }
   0xd   :  { %34 = vsyncpa [#allocation5 + $0x1], 0  ;;  %s4570_s4 = smov 0   ;;  %s4572_s30 = smov 0  }
   0xe   :  { %s4574_s24 = smov 0   ;;  %s4576_s25 = smov 0  }
   0xf LB: > { %5656 = sst [smem:[#allocation8_spill]] %s4430_s4  ;;  %s4591_s5 = sadd.s32 4294967295, %s4442_s25   ;;  %s4442_s25 = sphi %s4576_s25, %s5677_s25   ;;  %s4438_s24 = sphi %s4574_s24, %s5679_s24   ;;  %s4434_s30 = sphi %s4572_s30, %s5681_s30   ;;  %s4430_s4 = sphi %s4570_s4, %s5680_s4  }
  0x10   : > { %5657 = sst [smem:[#allocation9_spill]] %s4438_s24  ;;  %s3178_s1 = sadd.s32 4294967294, %s4442_s25  }
  0x11   : > { %5658 = sst [smem:[#allocation10_spill]] %s4442_s25  ;;  %s4595_s26 = sadd.s32 1, %s4442_s25  }
  0x12   : > { %5659 = sst [smem:[#allocation11_spill]] %s4595_s26  ;;  %s514_s2 = sadd.s32 1, %s4438_s24 }
  0x13   : > { %s511_s6 = ssub.s32 %s4442_s25, %s4595_s26  ;;  %p524_p0 = scmp.ne.s32.totalorder %s4438_s24, %s4434_s30 }
  0x14   : > { %p512_p1 = scmp.eq.s32.totalorder %s511_s6, 0  ;;  %p525_p2 = scmp.eq.s32.totalorder %s4591_s5, 1 }
  0x15   : > { %p530_p3 = scmp.ne.s32.totalorder %s4434_s30, %s4430_s4  ;;  %p531_p4 = scmp.eq.s32.totalorder %s3178_s1, 1 }
  0x16   : > { %s4606_s27 = scalar_select %p512_p1, %s4438_s24, %s514_s2  }
  0x17   : > { %p4608_p5 = por %p525_p2, %p524_p0  ;;  %p4612_p6 = por %p531_p4, %p530_p3 }
  0x18   : > { %5660 = sst [smem:[#allocation12_spill]] %s4606_s27  ;;  %p3181_p7 = scmp.ge.s32.totalorder %s4442_s25, 1 }
  0x19   : > { %s5662_s28 = scalar_select %p4612_p6, 1, 0 }
  0x1a   : > { %p646_p8 = scmp.lt.s32.totalorder %s4442_s25, 3 }
  0x1b   : > { %5663 = sst [smem:[#allocation13_spill]] %s5662_s28 }
  0x1c   : > { %p647_p9 = pnand %p3181_p7, %p646_p8 }
  0x1d   : > { %p713_p10 = scmp.lt.s32.totalorder (!%p647_p9), %s4591_s5, 1  ;;  %v4444_v0 = vmov (!%p647_p9), 0.0|0.0   ;;  %vm4445_vm0 = vmmov (!%p647_p9), 0   ;;  %v4446_v1 = vmov (!%p647_p9), 0.0   ;;  %s5664_s0 = sld [smem:[#allocation16_spill]] (!%p647_p9)  ;;  %v4447_v3 = vmov (!%p647_p9), 0  }
  0x1e   : > { %650 = sbr.rel (%p647_p9) target bundleno = 7385 (0x1cd9), region = 108  ;;  %3967 = vmatprep.subr.bf16.mxu0 (!%p647_p9), %v4444_v0  ;;  %3564 = vmatprep.mubr.msk.f32.mxu0 (!%p647_p9), %vm4445_vm0, %v4446_v1  ;;  %s5665_s25 = sld [smem:[#allocation14_spill]] (!%p647_p9)  ;;  %vm754_vm1 = vcmask (!%p647_p9), 1043456   ;;  %vm744_vm2 = vcmask (!%p647_p9), 293888   ;;  %vm849_vm3 = vcmask (!%p647_p9), 195584   ;;  %vm975_vm4 = vcmask (!%p647_p9), 523264  }
  0x1f   : > { %4302 = vset.pattern.permute.xlu0 (!%p647_p9), %v4447_v3  ;;  %4303 = vset.pattern.permute.xlu1 (!%p647_p9), %v4447_v3  ;;  %s5666_s3 = sld [smem:[#allocation15_spill]] (!%p647_p9)  ;;  %s5667_s6 = sld [smem:[#allocation17_spill]] (!%p647_p9)  ;;  %vm2168_vm5 = vcmask (!%p647_p9), 261120   ;;  %vm2258_vm6 = vcmask (!%p647_p9), 253952   ;;  %vm3050_vm7 = vcmask (!%p647_p9), 16384  }
  0x20   : > { %s5668_s2 = sld [smem:[#allocation18_spill]] (!%p647_p9)  ;;  %s5669_s28 = sld [smem:[#allocation21_spill]] (!%p647_p9) }
  0x21   : > { %s5670_s8 = sld [smem:[#allocation22_spill]] (!%p647_p9)  ;;  %s5646_s4 = sshll.u32 (!%p647_p9), %s4591_s5, 4 }
  0x22   : > { %s4448_s26 = smov (!%p647_p9), [#allocation4]  }
  0x23   : > { %v726_v2 = vld [vmem:[%s5664_s0] sm:$0xff] (!%p647_p9)  ;;  %v728_v4 = vld [vmem:[%s5664_s0 + $0x10] sm:$0xff] (!%p647_p9)  ;;  %v727_v5 = vld [vmem:[%s5664_s0 + $0x8] sm:$0xff] (!%p647_p9)  ;;  %s5672_s0 = sld [smem:[#allocation19_spill]] (!%p647_p9) }
  0x24   : > { %731 = vperm.xlu0 (!%p647_p9), %4302, %v726_v2   ;;  %741 = vperm.xlu1 (!%p647_p9), %4303, %v728_v4  }
  0x25   : > { %s714_s1 = scalar_select %p713_p10, %s4591_s5, 1  ;;  %v723_v13 = vld [vmem:[%s5666_s3] sm:$0xff]  ;;  %v724_v14 = vld [vmem:[%s5666_s3 + $0x8] sm:$0xff]  ;;  %v725_v15 = vld [vmem:[%s5666_s3 + $0x10] sm:$0xff] }
  0x26   : > { %v841_v16 = vld [vmem:[%s5667_s6] sm:$0xff]  ;;  %v842_v33 = vld [vmem:[%s5667_s6 + $0x8] sm:$0xff]  ;;  %v843_v34 = vld [vmem:[%s5667_s6 + $0x10] sm:$0xff]  ;;  %s5512_s3 = sand.u32 1, %s4434_s30  }
  0x27   : > { %s4253_s27 = smul.u32 40, %s714_s1  ;;  %3579 = vmatprep.mubr.msk.f32.mxu1 %vm849_vm3, %v841_v16  ;;  %v844_v35 = vld [vmem:[%s5667_s6 + $0x18] sm:$0xff]  ;;  %v846_v36 = vld [vmem:[%s5668_s2 + $0x8] sm:$0xff]  ;;  %v845_v37 = vld [vmem:[%s5668_s2] sm:$0xff]  ;;  %s5671_s1 = sld [smem:[#allocation20_spill]] }
  0x28   : > { %736 = vperm.xlu0 %4302, %v727_v5   ;;  %v848_v42 = vld [vmem:[%s5668_s2 + $0x18] sm:$0xff]  ;;  %v847_v44 = vld [vmem:[%s5668_s2 + $0x10] sm:$0xff]  ;;  %v953_v16 = vld [vmem:[%s5614_s9 + $0x20] sm:$0xff]  ;;  %s4352_s6 = sshll.u32 %s4448_s26, 4  ;;  %s4353_s6 = int_to_ptr.vmem [resolvable:$false] %s4352_s6 }
  0x29   : > { %s717_s29 = scalar_lea.vmem %s5665_s25, %s4253_s27  ;;  %s5535_s27 = scalar_lea.hbm %s5628_s23, %s5646_s4 }
  0x2a   : > { %v718_v6 = vld [vmem:[%s717_s29] sm:$0xff]  ;;  %v719_v7 = vld [vmem:[%s717_s29 + $0x8] sm:$0xff]  ;;  %v720_v8 = vld [vmem:[%s717_s29 + $0x10] sm:$0xff] }
  0x2b   : > { %v3968_v9 = vpack.c.bf16 %v719_v7, %v718_v6  ;;  %v721_v10 = vld [vmem:[%s717_s29 + $0x18] sm:$0xff]  ;;  %v722_v12 = vld [vmem:[%s717_s29 + $0x20] sm:$0xf]  ;;  %s3070_s29 = scalar_lea.sflag [#allocation5], %s5512_s3 }
  0x2c   : > { %v3971_v11 = vpack.c.bf16 %v721_v10, %v720_v8  ;;  %v949_v10 = vld [vmem:[%s5614_s9] sm:$0xff] }
  0x2d   : > { %3969 = vmatpush3.bf16.msra.mxu0 %v3968_v9 }
  0x2e   : > { %3970 = vmatprep.subr.bf16.mxu0 %v4444_v0 }
  0x31   : > { %3972 = vmatpush3.bf16.msra.mxu0 %v3971_v11  ;;  %v950_v11 = vld [vmem:[%s5614_s9 + $0x8] sm:$0xff] }
  0x32   : > { %3562 = vmatprep.subr.mxu0 %v4446_v1 }
  0x35   : > { %3563 = vmatpush3.msk.msra.mxu0 %vm754_vm1, %v722_v12  ;;  %v3977_v12 = vpack.c.bf16 %v950_v11, %v949_v10 }
  0x36   : > { %3565 = vmatmul.mubr.msk.f32.vlgmr.msra.gmra.mrb[0].mxu0 %vm744_vm2, %v723_v13  ;;  %v951_v13 = vld [vmem:[%s5614_s9 + $0x10] sm:$0xff] }
  0x37   : > { %3567 = vmatprep.mubr.msk.f32.mxu0 %vm4445_vm0, %v4446_v1 }
  0x3a   : > { %3568 = vmatmul.mubr.msk.f32.gmra.mrb[2].mxu0 %vm744_vm2, %v724_v14  ;;  %v952_v14 = vld [vmem:[%s5614_s9 + $0x18] sm:$0xff] }
  0x3b   : > { %3570 = vmatprep.mubr.msk.f32.mxu0 %vm4445_vm0, %v4446_v1 }
  0x3e   : > { %3571 = vmatmul.mubr.msk.f32.gmra.mrb[4].mxu0 %vm744_vm2, %v725_v15  ;;  %v3981_v15 = vpack.c.bf16 %v952_v14, %v951_v13 }
  0xa3   : > { %v732_v17 = vpop.permute.xlu0 %731  ;;  %v742_v25 = vpop.permute.xlu1 %741 }
  0xa7   : > { %v737_v21 = vpop.permute.xlu0 %736 }
 0x109   : > { %v824_v18 = vpop.f32.mrb[0].mxu0 }
 0x10a   : > { %v3566_v19 = vpop.f32.mrb[1].mxu0  ;;  %v825_v20 = vadd.f32 %v824_v18, %v732_v17  ;;  %v954_v17 = vld [vmem:[%s5614_s9 + $0x28] sm:$0xff] }
 0x10b   : > { %v3985_v18 = vpack.c.bf16 %v954_v17, %v953_v16  ;;  %v955_v19 = vld [vmem:[%s5614_s9 + $0x30] sm:$0xff] }
 0x10c   : > { %v838_v26 = vmax.f32 %v825_v20, 0.0  ;;  %v956_v20 = vld [vmem:[%s5614_s9 + $0x38] sm:$0xff] }
 0x10d   : > { %v829_v22 = vpop.f32.mrb[2].mxu0 }
 0x10e   : > { %v830_v23 = vadd.f32 %v829_v22, %v737_v21  ;;  %v3569_v24 = vpop.f32.mrb[3].mxu0  ;;  %v3989_v21 = vpack.c.bf16 %v956_v20, %v955_v19  ;;  %v958_v22 = vld [vmem:[%s5616_s11] sm:$0xff] }
 0x10f   : > { %v960_v24 = vld [vmem:[%s5616_s11 + $0x10] sm:$0xff] }
 0x110   : > { %v839_v27 = vmax.f32 %v830_v23, 0.0  ;;  %v959_v23 = vld [vmem:[%s5616_s11 + $0x8] sm:$0xff] }
 0x111   : > { %v834_v28 = vpop.f32.mrb[4].mxu0 }
 0x112   : > { %v835_v29 = vadd.f32 %v834_v28, %v742_v25  ;;  %v3572_v30 = vpop.f32.mrb[5].mxu0  ;;  %v3973_v31 = vpack.c.bf16 %v839_v27, %v838_v26  ;;  %v3993_v25 = vpack.c.bf16 %v959_v23, %v958_v22  ;;  %v961_v26 = vld [vmem:[%s5616_s11 + $0x18] sm:$0xff]  ;;  %v962_v28 = vld [vmem:[%s5616_s11 + $0x20] sm:$0xff] }
 0x113   : > { %v3997_v27 = vpack.c.bf16 %v961_v26, %v960_v24 }
 0x114   : > { %v840_v32 = vmax.f32 %v835_v29, 0.0  ;;  %3974 = vmatprep.subr.bf16.mxu1 %v3973_v31  ;;  %v963_v29 = vld [vmem:[%s5616_s11 + $0x28] sm:$0xff]  ;;  %3994 = vmatprep.subr.bf16.mxu0 %v3993_v25 }
 0x115   : > { %3976 = vmatpush3.bf16.msra.mxu1 %v3973_v31  ;;  %3996 = vmatpush3.bf16.msra.mxu0 %v3993_v25  ;;  %v4001_v30 = vpack.c.bf16 %v963_v29, %v962_v28  ;;  %v964_v31 = vld [vmem:[%s5616_s11 + $0x30] sm:$0xff] }
 0x116   : > { %3577 = vmatprep.subr.mxu1 %v840_v32  ;;  %3998 = vmatprep.subr.bf16.mxu0 %v3997_v27 }
 0x119   : > { %3578 = vmatpush3.msra.mxu1 %v840_v32  ;;  %v965_v32 = vld [vmem:[%s5616_s11 + $0x38] sm:$0xff]  ;;  %4000 = vmatpush3.bf16.msra.mxu0 %v3997_v27 }
 0x11a   : > { %3580 = vmatmul.mubr.msk.f32.vlgmr.msra.gmra.mrb[0].mxu1 %vm849_vm3, %v842_v33  ;;  %3978 = vmatprep.subr.bf16.mxu1 %v3977_v12  ;;  %v4005_v33 = vpack.c.bf16 %v965_v32, %v964_v31  ;;  %v3198_v31 = vld [vmem:[%s5617_s12] ss:$0 sm:$0xff] }
 0x11b   : > { %3582 = vmatprep.mubr.msk.f32.mxu1 %vm849_vm3, %v843_v34  ;;  %3980 = vmatpush3.bf16.msra.mxu1 %v3977_v12  ;;  %v966_v34 = vld [vmem:[%s5616_s11 + $0x40] sm:$0xff] }
 0x11c   : > { %3982 = vmatprep.subr.bf16.mxu1 %v3981_v15  ;;  %4002 = vmatprep.subr.bf16.mxu0 %v4001_v30 }
 0x11d   : > { %4004 = vmatpush3.bf16.msra.mxu0 %v4001_v30 }
 0x11e   : > { %3583 = vmatmul.mubr.msk.f32.gmra.mrb[2].mxu1 %vm849_vm3, %v844_v35  ;;  %v967_v35 = vld [vmem:[%s5616_s11 + $0x48] sm:$0xff]  ;;  %4006 = vmatprep.subr.bf16.mxu0 %v4005_v33 }
 0x11f   : > { %3984 = vmatpush3.bf16.msra.mxu1 %v3981_v15 }
 0x120   : > { %3986 = vmatprep.subr.bf16.mxu1 %v3985_v18 }
 0x121   : > { %4008 = vmatpush3.bf16.msra.mxu0 %v4005_v33 }
 0x123   : > { %3988 = vmatpush3.bf16.msra.mxu1 %v3985_v18  ;;  %v973_v18 = vld [vmem:[%s5616_s11 + $0x78] sm:$0xff] }
 0x124   : > { %3990 = vmatprep.subr.bf16.mxu1 %v3989_v21 }
 0x127   : > { %3992 = vmatpush3.bf16.msra.mxu1 %v3989_v21 }
 0x1ed   : > { %v3581_v38 = vpop.f32.mrb[0].mxu1 }
 0x1ee   : > { %v4672_v39 = vadd.f32 %v3581_v38, %v846_v36  ;;  %v928_v40 = vpop.f32.mrb[1].mxu1  ;;  %v4009_v36 = vpack.c.bf16 %v967_v35, %v966_v34  ;;  %v969_v38 = vld [vmem:[%s5616_s11 + $0x58] sm:$0xff] }
 0x1ef   : > { %v4674_v41 = vadd.f32 %v928_v40, %v845_v37  ;;  %v968_v37 = vld [vmem:[%s5616_s11 + $0x50] sm:$0xff] }
 0x1f0   : > { %v979_v43 = vsel %vm975_vm4, %v4672_v39, 0.0  ;;  %4010 = vmatprep.subr.bf16.mxu0 %v4009_v36  ;;  %v4013_v40 = vpack.c.bf16 %v969_v38, %v968_v37 }
 0x1f1   : > { %980 = vadd.xlane.f32.xlu0 %v979_v43  ;;  %v3584_v45 = vpop.f32.mrb[2].mxu1  ;;  %v976_v46 = vsel %vm975_vm4, %v4674_v41, 0.0  ;;  %v971_v43 = vld [vmem:[%s5616_s11 + $0x68] sm:$0xff]  ;;  %4012 = vmatpush3.bf16.msra.mxu0 %v4009_v36 }
 0x1f2   : > { %v4686_v47 = vadd.f32 %v3584_v45, %v848_v42  ;;  %v938_v48 = vpop.f32.mrb[3].mxu1  ;;  %977 = vadd.xlane.f32.xlu1 %v976_v46  ;;  %v970_v42 = vld [vmem:[%s5616_s11 + $0x60] sm:$0xff]  ;;  %4014 = vmatprep.subr.bf16.mxu0 %v4013_v40 }
 0x1f3   : > { %v4688_v49 = vadd.f32 %v938_v48, %v847_v44  ;;  %v4017_v44 = vpack.c.bf16 %v971_v43, %v970_v42 }
 0x1f4   : > { %v985_v50 = vsel %vm975_vm4, %v4686_v47, 0.0 }
 0x1f5   : > { %v982_v51 = vsel %vm975_vm4, %v4688_v49, 0.0  ;;  %4016 = vmatpush3.bf16.msra.mxu0 %v4013_v40 }
 0x1f6   : > { %983 = vadd.xlane.f32.xlu0 %v982_v51  ;;  %986 = vadd.xlane.f32.xlu1 %v985_v50 }
 0x1f7   : > { %4018 = vmatprep.subr.bf16.mxu0 %v4017_v44 }
 0x1f9   : > { %4020 = vmatpush3.bf16.msra.mxu0 %v4017_v44 }
 0x27e   : > { %v981_v52 = vpop.xlane.xlu0 %980 }
 0x27f   : > { %v990_v53 = vmul.f32 0.015625, %v981_v52  ;;  %v978_v54 = vpop.xlane.xlu1 %977 }
 0x280   : > { %v989_v55 = vmul.f32 0.015625, %v978_v54 }
 0x281   : > { %v4695_v56 = vsub.f32 %v4672_v39, %v990_v53 }
 0x282   : > { %v4698_v57 = vsub.f32 %v4674_v41, %v989_v55 }
 0x283   : > { %v984_v58 = vpop.xlane.xlu0 %983  ;;  %v987_v59 = vpop.xlane.xlu1 %986  ;;  %v998_v60 = vmul.f32 %v4695_v56, %v4695_v56 }
 0x284   : > { %v991_v61 = vmul.f32 0.015625, %v984_v58  ;;  %v992_v62 = vmul.f32 0.015625, %v987_v59  ;;  %v997_v63 = vmul.f32 %v4698_v57, %v4698_v57 }
 0x285   : > { %v1004_v2 = vsel %vm975_vm4, %v998_v60, 0.0 }
 0x286   : > { %v4706_v3 = vsub.f32 %v4688_v49, %v991_v61  ;;  %v4709_v4 = vsub.f32 %v4686_v47, %v992_v62  ;;  %1005 = vadd.xlane.f32.xlu1 %v1004_v2  ;;  %v1001_v5 = vsel %vm975_vm4, %v997_v63, 0.0  ;;  %v3191_v61 = vld [vmem:[%s5669_s28] ss:$0 sm:$0xff] }
 0x287   : > { %1002 = vadd.xlane.f32.xlu0 %v1001_v5 }
 0x288   : > { %v999_v6 = vmul.f32 %v4706_v3, %v4706_v3  ;;  %v1000_v7 = vmul.f32 %v4709_v4, %v4709_v4 }
 0x28a   : > { %v1007_v8 = vsel %vm975_vm4, %v999_v6, 0.0  ;;  %v1010_v9 = vsel %vm975_vm4, %v1000_v7, 0.0  ;;  %v3192_v7 = vld [vmem:[%s5670_s8] ss:$0 sm:$0xff] }
 0x28b   : > { %1008 = vadd.xlane.f32.xlu0 %v1007_v8  ;;  %1011 = vadd.xlane.f32.xlu1 %v1010_v9 }
 0x313   : > { %v1006_v45 = vpop.xlane.xlu1 %1005 }
 0x314   : > { %v1014_v46 = vmul.f32 0.015625, %v1006_v45  ;;  %v1003_v48 = vpop.xlane.xlu0 %1002 }
 0x315   : > { %v1013_v50 = vmul.f32 0.015625, %v1003_v48 }
 0x316   : > { %v1018_v51 = vadd.f32 1e-05, %v1014_v46 }
 0x317   : > { %v1017_v52 = vadd.f32 1e-05, %v1013_v50 }
 0x318   : > { %4304 = vrsqrt.f32 %v1018_v51  ;;  %v1009_v53 = vpop.xlane.xlu0 %1008  ;;  %v1012_v54 = vpop.xlane.xlu1 %1011 }
 0x319   : > { %4306 = vrsqrt.f32 %v1017_v52  ;;  %v1015_v55 = vmul.f32 0.015625, %v1009_v53  ;;  %v1016_v58 = vmul.f32 0.015625, %v1012_v54 }
 0x31b   : > { %v1019_v59 = vadd.f32 1e-05, %v1015_v55  ;;  %v1020_v60 = vadd.f32 1e-05, %v1016_v58 }
 0x31d   : > { %4308 = vrsqrt.f32 %v1019_v59 }
 0x31e   : > { %4310 = vrsqrt.f32 %v1020_v60 }
 0x322   : > { %v4305_v62 = vpop.eup %4304 }
 0x323   : > { %v4307_v63 = vpop.eup %4306  ;;  %v1030_v2 = vmul.f32 %v4305_v62, %v3191_v61 }
 0x324   : > { %v1029_v5 = vmul.f32 %v4307_v63, %v3191_v61 }
 0x325   : > { %v1034_v6 = vmul.f32 %v1030_v2, %v4695_v56 }
 0x326   : > { %v1033_v8 = vmul.f32 %v1029_v5, %v4698_v57  ;;  %v972_v57 = vld [vmem:[%s5616_s11 + $0x70] sm:$0xff] }
 0x327   : > { %v4309_v9 = vpop.eup %4308  ;;  %v1042_v13 = vadd.f32 %v3192_v7, %v1034_v6  ;;  %v4021_v19 = vpack.c.bf16 %v973_v18, %v972_v57  ;;  %v3205_v57 = vld [vmem:[%s5614_s9 + $0x70] sm:$0xff]  ;;  %v3206_v18 = vld [vmem:[%s5614_s9 + $0x78] sm:$0xff] }
 0x328   : > { %v4311_v10 = vpop.eup %4310  ;;  %v1041_v11 = vadd.f32 %v3192_v7, %v1033_v8  ;;  %v1031_v12 = vmul.f32 %v4309_v9, %v3191_v61 }
 0x329   : > { %v1032_v14 = vmul.f32 %v4311_v10, %v3191_v61  ;;  %4022 = vmatprep.subr.bf16.mxu0 %v4021_v19  ;;  %v3199_v10 = vld [vmem:[%s5614_s9 + $0x40] sm:$0xff] }
 0x32a   : > { %3601 = vmatprep.mubr.msk.f32.mxu1 %vm975_vm4, %v1041_v11  ;;  %v1035_v15 = vmul.f32 %v1031_v12, %v4706_v3  ;;  %4024 = vmatpush3.bf16.msra.mxu0 %v4021_v19  ;;  %v3193_v3 = vld [vmem:[%s5615_s10] ss:$0 sm:$0xff]  ;;  %v3200_v11 = vld [vmem:[%s5614_s9 + $0x48] sm:$0xff]  ;;  %v4037_v19 = vpack.c.bf16 %v3206_v18, %v3205_v57 }
 0x32b   : > { %3602 = vmatmul.mubr.msk.f32.vlgmr.msra.gmra.mrb[4].mxu1 %vm975_vm4, %v1042_v13  ;;  %v1036_v56 = vmul.f32 %v1032_v14, %v4709_v4  ;;  %v4025_v12 = vpack.c.bf16 %v3200_v11, %v3199_v10  ;;  %v3201_v13 = vld [vmem:[%s5614_s9 + $0x50] sm:$0xff]  ;;  %v3202_v14 = vld [vmem:[%s5614_s9 + $0x58] sm:$0xff] }
 0x32c   : > { %v1043_v16 = vadd.f32 %v3192_v7, %v1035_v15  ;;  %v4029_v15 = vpack.c.bf16 %v3202_v14, %v3201_v13  ;;  %v3218_v10 = vld [vmem:[%s5616_s11 + $0xd8] sm:$0xff]  ;;  %v3220_v13 = vld [vmem:[%s5616_s11 + $0xe8] sm:$0xff] }
 0x32d   : > { %v1044_v17 = vadd.f32 %v3192_v7, %v1036_v56  ;;  %4026 = vmatprep.subr.bf16.mxu1 %v4025_v12  ;;  %v3203_v56 = vld [vmem:[%s5614_s9 + $0x60] sm:$0xff] }
 0x32e   : > { %3604 = vmatprep.mubr.msk.f32.mxu1 %vm975_vm4, %v1043_v16  ;;  %4028 = vmatpush3.bf16.msra.mxu1 %v4025_v12  ;;  %v3204_v16 = vld [vmem:[%s5614_s9 + $0x68] sm:$0xff]  ;;  %v3219_v12 = vld [vmem:[%s5616_s11 + $0xe0] sm:$0xff] }
 0x32f   : > { %3605 = vmatmul.mubr.msk.f32.gmra.mrb[6].mxu1 %vm975_vm4, %v1044_v17  ;;  %4030 = vmatprep.subr.bf16.mxu1 %v4029_v15  ;;  %v4033_v17 = vpack.c.bf16 %v3204_v16, %v3203_v56  ;;  %v4065_v14 = vpack.c.bf16 %v3220_v13, %v3219_v12  ;;  %v3222_v56 = vld [vmem:[%s5616_s11 + $0xf8] sm:$0xff]  ;;  %v3235_v12 = vld [vmem:[%s5614_s9 + $0xa0] sm:$0xff]  ;;  %v3236_v13 = vld [vmem:[%s5614_s9 + $0xa8] sm:$0xff] }
 0x332   : > { %4032 = vmatpush3.bf16.msra.mxu1 %v4029_v15  ;;  %v3221_v15 = vld [vmem:[%s5616_s11 + $0xf0] sm:$0xff] }
 0x333   : > { %4034 = vmatprep.subr.bf16.mxu1 %v4033_v17  ;;  %v4069_v16 = vpack.c.bf16 %v3222_v56, %v3221_v15  ;;  %v3237_v15 = vld [vmem:[%s5614_s9 + $0xb0] sm:$0xff]  ;;  %v3238_v56 = vld [vmem:[%s5614_s9 + $0xb8] sm:$0xff] }
 0x336   : > { %4036 = vmatpush3.bf16.msra.mxu1 %v4033_v17  ;;  %v3225_v17 = vld [vmem:[%s5615_s10 + $0x1] ss:$0 sm:$0xff] }
 0x337   : > { %4038 = vmatprep.subr.bf16.mxu1 %v4037_v19 }
 0x33a   : > { %4040 = vmatpush3.bf16.msra.mxu1 %v4037_v19 }
 0x3fe   : > { %v3603_v4 = vpop.f32.mrb[4].mxu1 }
 0x3ff   : > { %v1133_v20 = vadd.f32 %v3603_v4, %v3193_v3  ;;  %v1127_v21 = vpop.f32.mrb[5].mxu1  ;;  %v3208_v4 = vld [vmem:[%s5616_s11 + $0x88] sm:$0xff] }
 0x400   : > { %v1128_v22 = vadd.f32 %v3193_v3, %v1127_v21 }
 0x401   : > { %v1147_v25 = vmax.f32 %v1133_v20, 0.0 }
 0x402   : > { %v1146_v23 = vmax.f32 %v1128_v22, 0.0  ;;  %v3606_v24 = vpop.f32.mrb[6].mxu1 }
 0x403   : > { %v1143_v26 = vadd.f32 %v3606_v24, %v3193_v3  ;;  %v1137_v27 = vpop.f32.mrb[7].mxu1 }
 0x404   : > { %v1138_v28 = vadd.f32 %v3193_v3, %v1137_v27  ;;  %3639 = vmatprep.mubr.f32.mxu0 %v1146_v23  ;;  %v3207_v3 = vld [vmem:[%s5616_s11 + $0x80] sm:$0xff] }
 0x405   : > { %3640 = vmatmul.mubr.f32.vlgmr.msra.gmra.mrb[6].mxu0 %v1147_v25  ;;  %v1149_v30 = vmax.f32 %v1143_v26, 0.0  ;;  %v4041_v20 = vpack.c.bf16 %v3208_v4, %v3207_v3 }
 0x406   : > { %v1148_v29 = vmax.f32 %v1138_v28, 0.0 }
 0x407   : > { %4042 = vmatprep.subr.bf16.mxu1 %v4041_v20 }
 0x408   : > { %3642 = vmatprep.mubr.f32.mxu0 %v1148_v29 }
 0x409   : > { %3643 = vmatmul.mubr.f32.gmra.mrb[8].mxu0 %v1149_v30 }
 0x4d8   : > { %v3641_v32 = vpop.f32.mrb[6].mxu0 }
 0x4d9   : > { %v1236_v33 = vadd.f32 %v3641_v32, %v4672_v39  ;;  %v1216_v34 = vpop.f32.mrb[7].mxu0 }
 0x4da   : > { %v1235_v35 = vadd.f32 %v1216_v34, %v4674_v41 }
 0x4db   : > { %v4812_v36 = vadd.f32 %v3198_v31, %v1236_v33  ;;  %v3223_v33 = vld [vmem:[%s5669_s28 + $0x1] ss:$0 sm:$0xff] }
 0x4dc   : > { %v4814_v37 = vadd.f32 %v3198_v31, %v1235_v35  ;;  %v3644_v38 = vpop.f32.mrb[8].mxu0 }
 0x4dd   : > { %v1238_v40 = vadd.f32 %v3644_v38, %v4686_v47  ;;  %v1226_v42 = vpop.f32.mrb[9].mxu0  ;;  %v1280_v43 = vsel %vm975_vm4, %v4812_v36, 0.0 }
 0x4de   : > { %v1237_v44 = vadd.f32 %v1226_v42, %v4688_v49  ;;  %1281 = vadd.xlane.f32.xlu1 %v1280_v43  ;;  %v1277_v39 = vsel %vm975_vm4, %v4814_v37, 0.0  ;;  %v3224_v43 = vld [vmem:[%s5670_s8 + $0x1] ss:$0 sm:$0xff] }
 0x4df   : > { %v4822_v45 = vadd.f32 %v3198_v31, %v1238_v40  ;;  %1278 = vadd.xlane.f32.xlu0 %v1277_v39 }
 0x4e0   : > { %v4824_v41 = vadd.f32 %v3198_v31, %v1237_v44 }
 0x4e1   : > { %v1286_v46 = vsel %vm975_vm4, %v4822_v45, 0.0 }
 0x4e2   : > { %1287 = vadd.xlane.f32.xlu1 %v1286_v46  ;;  %v1283_v47 = vsel %vm975_vm4, %v4824_v41, 0.0  ;;  %v3209_v46 = vld [vmem:[%s5616_s11 + $0x90] sm:$0xff] }
 0x4e3   : > { %1284 = vadd.xlane.f32.xlu0 %v1283_v47  ;;  %v3210_v47 = vld [vmem:[%s5616_s11 + $0x98] sm:$0xff] }
 0x56b   : > { %v1282_v48 = vpop.xlane.xlu1 %1281 }
 0x56c   : > { %v1290_v50 = vmul.f32 0.015625, %v1282_v48  ;;  %v1279_v49 = vpop.xlane.xlu0 %1278 }
 0x56d   : > { %v1289_v51 = vmul.f32 0.015625, %v1279_v49 }
 0x56e   : > { %v4831_v52 = vsub.f32 %v4812_v36, %v1290_v50 }
 0x56f   : > { %v4834_v53 = vsub.f32 %v4814_v37, %v1289_v51  ;;  %v1288_v54 = vpop.xlane.xlu1 %1287 }
 0x570   : > { %v1292_v55 = vmul.f32 0.015625, %v1288_v54  ;;  %v1285_v58 = vpop.xlane.xlu0 %1284  ;;  %v1298_v59 = vmul.f32 %v4831_v52, %v4831_v52 }
 0x571   : > { %v1291_v60 = vmul.f32 0.015625, %v1285_v58  ;;  %v1297_v61 = vmul.f32 %v4834_v53, %v4834_v53  ;;  %v3211_v58 = vld [vmem:[%s5616_s11 + $0xa0] sm:$0xff] }
 0x572   : > { %v4841_v62 = vsub.f32 %v4822_v45, %v1292_v55  ;;  %v1304_v63 = vsel %vm975_vm4, %v1298_v59, 0.0  ;;  %v4045_v55 = vpack.c.bf16 %v3210_v47, %v3209_v46  ;;  %v3212_v59 = vld [vmem:[%s5616_s11 + $0xa8] sm:$0xff] }
 0x573   : > { %v4845_v2 = vsub.f32 %v4824_v41, %v1291_v60  ;;  %1305 = vadd.xlane.f32.xlu1 %v1304_v63  ;;  %v1301_v5 = vsel %vm975_vm4, %v1297_v61, 0.0  ;;  %v3213_v63 = vld [vmem:[%s5616_s11 + $0xb0] sm:$0xff] }
 0x574   : > { %1302 = vadd.xlane.f32.xlu0 %v1301_v5  ;;  %v1300_v6 = vmul.f32 %v4841_v62, %v4841_v62 }
 0x575   : > { %v1299_v7 = vmul.f32 %v4845_v2, %v4845_v2 }
 0x576   : > { %v1310_v8 = vsel %vm975_vm4, %v1300_v6, 0.0  ;;  %v3215_v6 = vld [vmem:[%s5616_s11 + $0xc0] sm:$0xff] }
 0x577   : > { %1311 = vadd.xlane.f32.xlu1 %v1310_v8  ;;  %v1307_v9 = vsel %vm975_vm4, %v1299_v7, 0.0  ;;  %v3216_v7 = vld [vmem:[%s5616_s11 + $0xc8] sm:$0xff] }
 0x578   : > { %1308 = vadd.xlane.f32.xlu0 %v1307_v9  ;;  %v4057_v8 = vpack.c.bf16 %v3216_v7, %v3215_v6  ;;  %v3217_v9 = vld [vmem:[%s5616_s11 + $0xd0] sm:$0xff]  ;;  %v3231_v6 = vld [vmem:[%s5614_s9 + $0x80] sm:$0xff]  ;;  %v3232_v7 = vld [vmem:[%s5614_s9 + $0x88] sm:$0xff] }
 0x579   : > { %v4061_v11 = vpack.c.bf16 %v3218_v10, %v3217_v9  ;;  %v3233_v9 = vld [vmem:[%s5614_s9 + $0x90] sm:$0xff]  ;;  %v3234_v10 = vld [vmem:[%s5614_s9 + $0x98] sm:$0xff] }
 0x600   : > { %v1306_v21 = vpop.xlane.xlu1 %1305 }
 0x601   : > { %v1314_v22 = vmul.f32 0.015625, %v1306_v21  ;;  %v1303_v23 = vpop.xlane.xlu0 %1302 }
 0x602   : > { %v1313_v24 = vmul.f32 0.015625, %v1303_v23 }
 0x603   : > { %v1318_v25 = vadd.f32 1e-05, %v1314_v22 }
 0x604   : > { %v1317_v26 = vadd.f32 1e-05, %v1313_v24  ;;  %v1312_v27 = vpop.xlane.xlu1 %1311 }
 0x605   : > { %4312 = vrsqrt.f32 %v1318_v25  ;;  %v1316_v28 = vmul.f32 0.015625, %v1312_v27  ;;  %v1309_v29 = vpop.xlane.xlu0 %1308  ;;  %v3230_v27 = vld [vmem:[%s5617_s12 + $0x1] ss:$0 sm:$0xff] }
 0x606   : > { %4314 = vrsqrt.f32 %v1317_v26  ;;  %v1315_v30 = vmul.f32 0.015625, %v1309_v29 }
 0x607   : > { %v1320_v31 = vadd.f32 1e-05, %v1316_v28 }
 0x608   : > { %v1319_v32 = vadd.f32 1e-05, %v1315_v30 }
 0x609   : > { %4316 = vrsqrt.f32 %v1320_v31 }
 0x60a   : > { %4318 = vrsqrt.f32 %v1319_v32 }
 0x60f   : > { %v4313_v34 = vpop.eup %4312 }
 0x610   : > { %v4315_v35 = vpop.eup %4314  ;;  %v1330_v38 = vmul.f32 %v4313_v34, %v3223_v33 }
 0x611   : > { %v1329_v40 = vmul.f32 %v4315_v35, %v3223_v33 }
 0x612   : > { %v1334_v42 = vmul.f32 %v1330_v38, %v4831_v52 }
 0x613   : > { %v4317_v44 = vpop.eup %4316  ;;  %v1333_v39 = vmul.f32 %v1329_v40, %v4834_v53 }
 0x614   : > { %v4319_v48 = vpop.eup %4318  ;;  %v1332_v50 = vmul.f32 %v4317_v44, %v3223_v33  ;;  %v1342_v52 = vadd.f32 %v3224_v43, %v1334_v42 }
 0x615   : > { %v1341_v49 = vadd.f32 %v3224_v43, %v1333_v39  ;;  %v1331_v51 = vmul.f32 %v4319_v48, %v3223_v33 }
 0x616   : > { %v1336_v54 = vmul.f32 %v1332_v50, %v4841_v62  ;;  %v4049_v62 = vpack.c.bf16 %v3212_v59, %v3211_v58 }
 0x617   : > { %3661 = vmatprep.mubr.msk.f32.mxu1 %vm975_vm4, %v1341_v49  ;;  %v1335_v53 = vmul.f32 %v1331_v51, %v4845_v2  ;;  %v3214_v2 = vld [vmem:[%s5616_s11 + $0xb8] sm:$0xff] }
 0x618   : > { %3662 = vmatmul.mubr.msk.f32.vlgmr.msra.gmra.mrb[8].mxu1 %vm975_vm4, %v1342_v52  ;;  %v1344_v61 = vadd.f32 %v3224_v43, %v1336_v54  ;;  %v4053_v5 = vpack.c.bf16 %v3214_v2, %v3213_v63 }
 0x619   : > { %v1343_v60 = vadd.f32 %v3224_v43, %v1335_v53  ;;  %4044 = vmatpush3.bf16.msra.mxu1 %v4041_v20 }
 0x61a   : > { %4046 = vmatprep.subr.bf16.mxu1 %v4045_v55 }
 0x61b   : > { %3664 = vmatprep.mubr.msk.f32.mxu1 %vm975_vm4, %v1343_v60 }
 0x61c   : > { %3665 = vmatmul.mubr.msk.f32.gmra.mrb[10].mxu1 %vm975_vm4, %v1344_v61 }
 0x61d   : > { %4048 = vmatpush3.bf16.msra.mxu1 %v4045_v55 }
 0x61e   : > { %4050 = vmatprep.subr.bf16.mxu1 %v4049_v62 }
 0x621   : > { %4052 = vmatpush3.bf16.msra.mxu1 %v4049_v62 }
 0x622   : > { %4054 = vmatprep.subr.bf16.mxu1 %v4053_v5 }
 0x625   : > { %4056 = vmatpush3.bf16.msra.mxu1 %v4053_v5 }
 0x626   : > { %4058 = vmatprep.subr.bf16.mxu1 %v4057_v8 }
 0x629   : > { %4060 = vmatpush3.bf16.msra.mxu1 %v4057_v8  ;;  %v4073_v8 = vpack.c.bf16 %v3232_v7, %v3231_v6  ;;  %v3250_v6 = vld [vmem:[%s5616_s11 + $0x158] sm:$0xff] }
 0x62a   : > { %4062 = vmatprep.subr.bf16.mxu1 %v4061_v11 }
 0x62b   : > { %4074 = vmatprep.subr.bf16.mxu0 %v4073_v8 }
 0x62c   : > { %4076 = vmatpush3.bf16.msra.mxu0 %v4073_v8  ;;  %v3251_v8 = vld [vmem:[%s5616_s11 + $0x160] sm:$0xff] }
 0x62d   : > { %4064 = vmatpush3.bf16.msra.mxu1 %v4061_v11  ;;  %v4077_v11 = vpack.c.bf16 %v3234_v10, %v3233_v9  ;;  %v3252_v9 = vld [vmem:[%s5616_s11 + $0x168] sm:$0xff] }
 0x62e   : > { %4066 = vmatprep.subr.bf16.mxu1 %v4065_v14  ;;  %v4113_v10 = vpack.c.bf16 %v3252_v9, %v3251_v8  ;;  %v3267_v8 = vld [vmem:[%s5614_s9 + $0xe0] sm:$0xff]  ;;  %v3268_v9 = vld [vmem:[%s5614_s9 + $0xe8] sm:$0xff] }
 0x62f   : > { %4078 = vmatprep.subr.bf16.mxu0 %v4077_v11 }
 0x630   : > { %4080 = vmatpush3.bf16.msra.mxu0 %v4077_v11  ;;  %v3253_v11 = vld [vmem:[%s5616_s11 + $0x170] sm:$0xff] }
 0x631   : > { %4068 = vmatpush3.bf16.msra.mxu1 %v4065_v14  ;;  %v4081_v14 = vpack.c.bf16 %v3236_v13, %v3235_v12  ;;  %v3254_v12 = vld [vmem:[%s5616_s11 + $0x178] sm:$0xff] }
 0x632   : > { %4070 = vmatprep.subr.bf16.mxu1 %v4069_v16  ;;  %v4117_v13 = vpack.c.bf16 %v3254_v12, %v3253_v11  ;;  %v3269_v11 = vld [vmem:[%s5614_s9 + $0xf0] sm:$0xff]  ;;  %v3270_v12 = vld [vmem:[%s5614_s9 + $0xf8] sm:$0xff] }
 0x633   : > { %4082 = vmatprep.subr.bf16.mxu0 %v4081_v14 }
 0x634   : > { %4084 = vmatpush3.bf16.msra.mxu0 %v4081_v14  ;;  %v3257_v14 = vld [vmem:[%s5615_s10 + $0x2] ss:$0 sm:$0xff] }
 0x635   : > { %4072 = vmatpush3.bf16.msra.mxu1 %v4069_v16  ;;  %v4085_v16 = vpack.c.bf16 %v3238_v56, %v3237_v15 }
 0x637   : > { %4086 = vmatprep.subr.bf16.mxu0 %v4085_v16 }
 0x638   : > { %4088 = vmatpush3.bf16.msra.mxu0 %v4085_v16 }
 0x6eb   : > { %v3663_v57 = vpop.f32.mrb[8].mxu1 }
 0x6ec   : > { %v1433_v18 = vadd.f32 %v3663_v57, %v3225_v17  ;;  %v1427_v19 = vpop.f32.mrb[9].mxu1  ;;  %v3240_v57 = vld [vmem:[%s5616_s11 + $0x108] sm:$0xff] }
 0x6ed   : > { %v1428_v3 = vadd.f32 %v3225_v17, %v1427_v19 }
 0x6ee   : > { %v1447_v21 = vmax.f32 %v1433_v18, 0.0 }
 0x6ef   : > { %v1446_v4 = vmax.f32 %v1428_v3, 0.0  ;;  %v3666_v20 = vpop.f32.mrb[10].mxu1 }
 0x6f0   : > { %v1443_v22 = vadd.f32 %v3666_v20, %v3225_v17  ;;  %v1437_v23 = vpop.f32.mrb[11].mxu1 }
 0x6f1   : > { %v1438_v24 = vadd.f32 %v3225_v17, %v1437_v23  ;;  %3699 = vmatprep.mubr.f32.mxu1 %v1446_v4  ;;  %v3239_v17 = vld [vmem:[%s5616_s11 + $0x100] sm:$0xff] }
 0x6f2   : > { %3700 = vmatmul.mubr.f32.vlgmr.msra.gmra.mrb[12].mxu1 %v1447_v21  ;;  %v1449_v26 = vmax.f32 %v1443_v22, 0.0  ;;  %v4089_v18 = vpack.c.bf16 %v3240_v57, %v3239_v17 }
 0x6f3   : > { %v1448_v25 = vmax.f32 %v1438_v24, 0.0 }
 0x6f4   : > { %4090 = vmatprep.subr.bf16.mxu0 %v4089_v18 }
 0x6f5   : > { %3702 = vmatprep.mubr.f32.mxu1 %v1448_v25 }
 0x6f6   : > { %3703 = vmatmul.mubr.f32.gmra.mrb[14].mxu1 %v1449_v26 }
 0x7c5   : > { %v3701_v28 = vpop.f32.mrb[12].mxu1 }
 0x7c6   : > { %v1536_v29 = vadd.f32 %v3701_v28, %v4812_v36  ;;  %v1516_v30 = vpop.f32.mrb[13].mxu1 }
 0x7c7   : > { %v1535_v31 = vadd.f32 %v1516_v30, %v4814_v37 }
 0x7c8   : > { %v4948_v32 = vadd.f32 %v3230_v27, %v1536_v29  ;;  %v3255_v29 = vld [vmem:[%s5669_s28 + $0x2] ss:$0 sm:$0xff] }
 0x7c9   : > { %v4950_v33 = vadd.f32 %v3230_v27, %v1535_v31  ;;  %v3704_v34 = vpop.f32.mrb[14].mxu1 }
 0x7ca   : > { %v1538_v35 = vadd.f32 %v3704_v34, %v4822_v45  ;;  %v1526_v38 = vpop.f32.mrb[15].mxu1  ;;  %v1580_v40 = vsel %vm975_vm4, %v4948_v32, 0.0 }
 0x7cb   : > { %v1537_v42 = vadd.f32 %v1526_v38, %v4824_v41  ;;  %1581 = vadd.xlane.f32.xlu1 %v1580_v40  ;;  %v1577_v36 = vsel %vm975_vm4, %v4950_v33, 0.0  ;;  %v3256_v40 = vld [vmem:[%s5670_s8 + $0x2] ss:$0 sm:$0xff] }
 0x7cc   : > { %v4958_v43 = vadd.f32 %v3230_v27, %v1538_v35  ;;  %1578 = vadd.xlane.f32.xlu0 %v1577_v36 }
 0x7cd   : > { %v4960_v37 = vadd.f32 %v3230_v27, %v1537_v42 }
 0x7ce   : > { %v1586_v44 = vsel %vm975_vm4, %v4958_v43, 0.0 }
 0x7cf   : > { %1587 = vadd.xlane.f32.xlu1 %v1586_v44  ;;  %v1583_v45 = vsel %vm975_vm4, %v4960_v37, 0.0  ;;  %v3241_v44 = vld [vmem:[%s5616_s11 + $0x110] sm:$0xff] }
 0x7d0   : > { %1584 = vadd.xlane.f32.xlu0 %v1583_v45  ;;  %v3242_v45 = vld [vmem:[%s5616_s11 + $0x118] sm:$0xff] }
 0x858   : > { %v1582_v39 = vpop.xlane.xlu1 %1581 }
 0x859   : > { %v1590_v46 = vmul.f32 0.015625, %v1582_v39  ;;  %v1579_v41 = vpop.xlane.xlu0 %1578 }
 0x85a   : > { %v1589_v47 = vmul.f32 0.015625, %v1579_v41 }
 0x85b   : > { %v4967_v48 = vsub.f32 %v4948_v32, %v1590_v46 }
 0x85c   : > { %v4970_v50 = vsub.f32 %v4950_v33, %v1589_v47  ;;  %v1588_v49 = vpop.xlane.xlu1 %1587 }
 0x85d   : > { %v1592_v51 = vmul.f32 0.015625, %v1588_v49  ;;  %v1585_v52 = vpop.xlane.xlu0 %1584  ;;  %v1598_v54 = vmul.f32 %v4967_v48, %v4967_v48 }
 0x85e   : > { %v1591_v55 = vmul.f32 0.015625, %v1585_v52  ;;  %v1597_v53 = vmul.f32 %v4970_v50, %v4970_v50  ;;  %v3243_v52 = vld [vmem:[%s5616_s11 + $0x120] sm:$0xff] }
 0x85f   : > { %v4977_v58 = vsub.f32 %v4958_v43, %v1592_v51  ;;  %v1604_v59 = vsel %vm975_vm4, %v1598_v54, 0.0  ;;  %v4093_v51 = vpack.c.bf16 %v3242_v45, %v3241_v44  ;;  %v3244_v54 = vld [vmem:[%s5616_s11 + $0x128] sm:$0xff] }
 0x860   : > { %v4981_v60 = vsub.f32 %v4960_v37, %v1591_v55  ;;  %1605 = vadd.xlane.f32.xlu1 %v1604_v59  ;;  %v1601_v61 = vsel %vm975_vm4, %v1597_v53, 0.0  ;;  %v3245_v59 = vld [vmem:[%s5616_s11 + $0x130] sm:$0xff] }
 0x861   : > { %1602 = vadd.xlane.f32.xlu0 %v1601_v61  ;;  %v1600_v62 = vmul.f32 %v4977_v58, %v4977_v58 }
 0x862   : > { %v1599_v63 = vmul.f32 %v4981_v60, %v4981_v60 }
 0x863   : > { %v1610_v2 = vsel %vm975_vm4, %v1600_v62, 0.0  ;;  %v3247_v62 = vld [vmem:[%s5616_s11 + $0x140] sm:$0xff] }
 0x864   : > { %1611 = vadd.xlane.f32.xlu1 %v1610_v2  ;;  %v1607_v5 = vsel %vm975_vm4, %v1599_v63, 0.0  ;;  %v3248_v63 = vld [vmem:[%s5616_s11 + $0x148] sm:$0xff] }
 0x865   : > { %1608 = vadd.xlane.f32.xlu0 %v1607_v5  ;;  %v4105_v2 = vpack.c.bf16 %v3248_v63, %v3247_v62  ;;  %v3249_v5 = vld [vmem:[%s5616_s11 + $0x150] sm:$0xff]  ;;  %v3263_v62 = vld [vmem:[%s5614_s9 + $0xc0] sm:$0xff]  ;;  %v3264_v63 = vld [vmem:[%s5614_s9 + $0xc8] sm:$0xff] }
 0x866   : > { %v4109_v7 = vpack.c.bf16 %v3250_v6, %v3249_v5  ;;  %v3265_v5 = vld [vmem:[%s5614_s9 + $0xd0] sm:$0xff]  ;;  %v3266_v6 = vld [vmem:[%s5614_s9 + $0xd8] sm:$0xff] }
 0x8ed   : > { %v1606_v19 = vpop.xlane.xlu1 %1605 }
 0x8ee   : > { %v1614_v3 = vmul.f32 0.015625, %v1606_v19  ;;  %v1603_v4 = vpop.xlane.xlu0 %1602 }
 0x8ef   : > { %v1613_v20 = vmul.f32 0.015625, %v1603_v4 }
 0x8f0   : > { %v1618_v21 = vadd.f32 1e-05, %v1614_v3 }
 0x8f1   : > { %v1617_v22 = vadd.f32 1e-05, %v1613_v20  ;;  %v1612_v23 = vpop.xlane.xlu1 %1611 }
 0x8f2   : > { %4320 = vrsqrt.f32 %v1618_v21  ;;  %v1616_v24 = vmul.f32 0.015625, %v1612_v23  ;;  %v1609_v25 = vpop.xlane.xlu0 %1608  ;;  %v3262_v23 = vld [vmem:[%s5617_s12 + $0x2] ss:$0 sm:$0xff] }
 0x8f3   : > { %4322 = vrsqrt.f32 %v1617_v22  ;;  %v1615_v26 = vmul.f32 0.015625, %v1609_v25 }
 0x8f4   : > { %v1620_v27 = vadd.f32 1e-05, %v1616_v24 }
 0x8f5   : > { %v1619_v28 = vadd.f32 1e-05, %v1615_v26 }
 0x8f6   : > { %4324 = vrsqrt.f32 %v1620_v27 }
 0x8f7   : > { %4326 = vrsqrt.f32 %v1619_v28 }
 0x8fc   : > { %v4321_v30 = vpop.eup %4320 }
 0x8fd   : > { %v4323_v31 = vpop.eup %4322  ;;  %v1630_v34 = vmul.f32 %v4321_v30, %v3255_v29 }
 0x8fe   : > { %v1629_v35 = vmul.f32 %v4323_v31, %v3255_v29 }
 0x8ff   : > { %v1634_v38 = vmul.f32 %v1630_v34, %v4967_v48 }
 0x900   : > { %v4325_v42 = vpop.eup %4324  ;;  %v1633_v36 = vmul.f32 %v1629_v35, %v4970_v50 }
 0x901   : > { %v4327_v39 = vpop.eup %4326  ;;  %v1632_v46 = vmul.f32 %v4325_v42, %v3255_v29  ;;  %v1642_v48 = vadd.f32 %v3256_v40, %v1634_v38 }
 0x902   : > { %v1641_v41 = vadd.f32 %v3256_v40, %v1633_v36  ;;  %v1631_v47 = vmul.f32 %v4327_v39, %v3255_v29 }
 0x903   : > { %v1636_v49 = vmul.f32 %v1632_v46, %v4977_v58  ;;  %v4097_v58 = vpack.c.bf16 %v3244_v54, %v3243_v52 }
 0x904   : > { %3721 = vmatprep.mubr.msk.f32.mxu0 %vm975_vm4, %v1641_v41  ;;  %v1635_v50 = vmul.f32 %v1631_v47, %v4981_v60  ;;  %v3246_v60 = vld [vmem:[%s5616_s11 + $0x138] sm:$0xff] }
 0x905   : > { %3722 = vmatmul.mubr.msk.f32.vlgmr.msra.gmra.mrb[10].mxu0 %vm975_vm4, %v1642_v48  ;;  %v1644_v53 = vadd.f32 %v3256_v40, %v1636_v49  ;;  %v4101_v61 = vpack.c.bf16 %v3246_v60, %v3245_v59 }
 0x906   : > { %v1643_v55 = vadd.f32 %v3256_v40, %v1635_v50  ;;  %4092 = vmatpush3.bf16.msra.mxu0 %v4089_v18 }
 0x907   : > { %4094 = vmatprep.subr.bf16.mxu0 %v4093_v51 }
 0x908   : > { %3724 = vmatprep.mubr.msk.f32.mxu0 %vm975_vm4, %v1643_v55 }
 0x909   : > { %3725 = vmatmul.mubr.msk.f32.gmra.mrb[12].mxu0 %vm975_vm4, %v1644_v53 }
 0x90a   : > { %4096 = vmatpush3.bf16.msra.mxu0 %v4093_v51 }
 0x90b   : > { %4098 = vmatprep.subr.bf16.mxu0 %v4097_v58 }
 0x90e   : > { %4100 = vmatpush3.bf16.msra.mxu0 %v4097_v58 }
 0x90f   : > { %4102 = vmatprep.subr.bf16.mxu0 %v4101_v61 }
 0x912   : > { %4104 = vmatpush3.bf16.msra.mxu0 %v4101_v61 }
 0x913   : > { %4106 = vmatprep.subr.bf16.mxu0 %v4105_v2 }
 0x916   : > { %4108 = vmatpush3.bf16.msra.mxu0 %v4105_v2  ;;  %v4121_v2 = vpack.c.bf16 %v3264_v63, %v3263_v62  ;;  %v3282_v62 = vld [vmem:[%s5616_s11 + $0x1d8] sm:$0xff] }
 0x917   : > { %4110 = vmatprep.subr.bf16.mxu0 %v4109_v7 }
 0x918   : > { %4122 = vmatprep.subr.bf16.mxu1 %v4121_v2 }
 0x919   : > { %4124 = vmatpush3.bf16.msra.mxu1 %v4121_v2  ;;  %v3283_v2 = vld [vmem:[%s5616_s11 + $0x1e0] sm:$0xff] }
 0x91a   : > { %4112 = vmatpush3.bf16.msra.mxu0 %v4109_v7  ;;  %v4125_v7 = vpack.c.bf16 %v3266_v6, %v3265_v5  ;;  %v3284_v5 = vld [vmem:[%s5616_s11 + $0x1e8] sm:$0xff] }
 0x91b   : > { %4114 = vmatprep.subr.bf16.mxu0 %v4113_v10  ;;  %v4161_v6 = vpack.c.bf16 %v3284_v5, %v3283_v2  ;;  %v2246_v2 = vld [vmem:[%s5620_s15 + $0x10] sm:$0xff]  ;;  %v2247_v5 = vld [vmem:[%s5620_s15 + $0x18] sm:$0xff] }
 0x91c   : > { %4126 = vmatprep.subr.bf16.mxu1 %v4125_v7 }
 0x91d   : > { %4128 = vmatpush3.bf16.msra.mxu1 %v4125_v7  ;;  %v3285_v7 = vld [vmem:[%s5616_s11 + $0x1f0] sm:$0xff] }
 0x91e   : > { %4116 = vmatpush3.bf16.msra.mxu0 %v4113_v10  ;;  %v4129_v10 = vpack.c.bf16 %v3268_v9, %v3267_v8  ;;  %v3286_v8 = vld [vmem:[%s5616_s11 + $0x1f8] sm:$0xff] }
 0x91f   : > { %4118 = vmatprep.subr.bf16.mxu0 %v4117_v13  ;;  %v4165_v9 = vpack.c.bf16 %v3286_v8, %v3285_v7 }
 0x920   : > { %4130 = vmatprep.subr.bf16.mxu1 %v4129_v10 }
 0x921   : > { %4132 = vmatpush3.bf16.msra.mxu1 %v4129_v10  ;;  %v3289_v10 = vld [vmem:[%s5615_s10 + $0x3] ss:$0 sm:$0xff] }
 0x922   : > { %4120 = vmatpush3.bf16.msra.mxu0 %v4117_v13  ;;  %v4133_v13 = vpack.c.bf16 %v3270_v12, %v3269_v11 }
 0x923   : > { %4169 = vmatprep.subr.bf16.mxu0 %v4444_v0 }
 0x924   : > { %4134 = vmatprep.subr.bf16.mxu1 %v4133_v13 }
 0x925   : > { %4136 = vmatpush3.bf16.msra.mxu1 %v4133_v13 }
 0x9d8   : > { %v3723_v15 = vpop.f32.mrb[10].mxu0 }
 0x9d9   : > { %v1733_v56 = vadd.f32 %v3723_v15, %v3257_v14  ;;  %v1727_v16 = vpop.f32.mrb[11].mxu0  ;;  %v3272_v15 = vld [vmem:[%s5616_s11 + $0x188] sm:$0xff] }
 0x9da   : > { %v1728_v17 = vadd.f32 %v3257_v14, %v1727_v16 }
 0x9db   : > { %v1747_v19 = vmax.f32 %v1733_v56, 0.0 }
 0x9dc   : > { %v1746_v57 = vmax.f32 %v1728_v17, 0.0  ;;  %v3726_v18 = vpop.f32.mrb[12].mxu0 }
 0x9dd   : > { %v1743_v3 = vadd.f32 %v3726_v18, %v3257_v14  ;;  %v1737_v4 = vpop.f32.mrb[13].mxu0 }
 0x9de   : > { %v1738_v20 = vadd.f32 %v3257_v14, %v1737_v4  ;;  %3759 = vmatprep.mubr.f32.mxu0 %v1746_v57  ;;  %v3271_v14 = vld [vmem:[%s5616_s11 + $0x180] sm:$0xff] }
 0x9df   : > { %3760 = vmatmul.mubr.f32.vlgmr.msra.gmra.mrb[14].mxu0 %v1747_v19  ;;  %v1749_v22 = vmax.f32 %v1743_v3, 0.0  ;;  %v4137_v56 = vpack.c.bf16 %v3272_v15, %v3271_v14 }
 0x9e0   : > { %v1748_v21 = vmax.f32 %v1738_v20, 0.0 }
 0x9e1   : > { %4138 = vmatprep.subr.bf16.mxu1 %v4137_v56 }
 0x9e2   : > { %3762 = vmatprep.mubr.f32.mxu0 %v1748_v21 }
 0x9e3   : > { %3763 = vmatmul.mubr.f32.gmra.mrb[16].mxu0 %v1749_v22 }
 0x9e4   : > { %3833 = vmatprep.mubr.msk.f32.mxu0 %vm4445_vm0, %v4446_v1 }
 0xab2   : > { %v3761_v24 = vpop.f32.mrb[14].mxu0 }
 0xab3   : > { %v1836_v25 = vadd.f32 %v3761_v24, %v4948_v32  ;;  %v1816_v26 = vpop.f32.mrb[15].mxu0 }
 0xab4   : > { %v1835_v27 = vadd.f32 %v1816_v26, %v4950_v33 }
 0xab5   : > { %v5087_v28 = vadd.f32 %v3262_v23, %v1836_v25  ;;  %v3287_v25 = vld [vmem:[%s5669_s28 + $0x3] ss:$0 sm:$0xff] }
 0xab6   : > { %v5089_v29 = vadd.f32 %v3262_v23, %v1835_v27  ;;  %v3764_v30 = vpop.f32.mrb[16].mxu0 }
 0xab7   : > { %v1838_v31 = vadd.f32 %v3764_v30, %v4958_v43  ;;  %v1826_v34 = vpop.f32.mrb[17].mxu0  ;;  %v1880_v35 = vsel %vm975_vm4, %v5087_v28, 0.0 }
 0xab8   : > { %v1837_v38 = vadd.f32 %v1826_v34, %v4960_v37  ;;  %1881 = vadd.xlane.f32.xlu1 %v1880_v35  ;;  %v1877_v32 = vsel %vm975_vm4, %v5089_v29, 0.0  ;;  %v3288_v35 = vld [vmem:[%s5670_s8 + $0x3] ss:$0 sm:$0xff]  ;;  %s4354_s8 = scalar_lea.vmem %s4353_s6, 32 }
 0xab9   : > { %v5097_v40 = vadd.f32 %v3262_v23, %v1838_v31  ;;  %1878 = vadd.xlane.f32.xlu0 %v1877_v32 }
 0xaba   : > { %v5099_v33 = vadd.f32 %v3262_v23, %v1837_v38 }
 0xabb   : > { %v1886_v42 = vsel %vm975_vm4, %v5097_v40, 0.0 }
 0xabc   : > { %1887 = vadd.xlane.f32.xlu1 %v1886_v42  ;;  %v1883_v43 = vsel %vm975_vm4, %v5099_v33, 0.0  ;;  %v3273_v42 = vld [vmem:[%s5616_s11 + $0x190] sm:$0xff] }
 0xabd   : > { %1884 = vadd.xlane.f32.xlu0 %v1883_v43  ;;  %v3274_v43 = vld [vmem:[%s5616_s11 + $0x198] sm:$0xff] }
 0xb45   : > { %v1882_v36 = vpop.xlane.xlu1 %1881 }
 0xb46   : > { %v1890_v44 = vmul.f32 0.015625, %v1882_v36  ;;  %v1879_v37 = vpop.xlane.xlu0 %1878 }
 0xb47   : > { %v1889_v45 = vmul.f32 0.015625, %v1879_v37 }
 0xb48   : > { %v5106_v39 = vsub.f32 %v5087_v28, %v1890_v44 }
 0xb49   : > { %v5109_v46 = vsub.f32 %v5089_v29, %v1889_v45  ;;  %v1888_v41 = vpop.xlane.xlu1 %1887 }
 0xb4a   : > { %v1892_v47 = vmul.f32 0.015625, %v1888_v41  ;;  %v1885_v48 = vpop.xlane.xlu0 %1884  ;;  %v1898_v49 = vmul.f32 %v5106_v39, %v5106_v39 }
 0xb4b   : > { %v1891_v51 = vmul.f32 0.015625, %v1885_v48  ;;  %v1897_v50 = vmul.f32 %v5109_v46, %v5109_v46  ;;  %v3275_v48 = vld [vmem:[%s5616_s11 + $0x1a0] sm:$0xff] }
 0xb4c   : > { %v5116_v52 = vsub.f32 %v5097_v40, %v1892_v47  ;;  %v1904_v54 = vsel %vm975_vm4, %v1898_v49, 0.0  ;;  %v4141_v47 = vpack.c.bf16 %v3274_v43, %v3273_v42  ;;  %v3276_v49 = vld [vmem:[%s5616_s11 + $0x1a8] sm:$0xff] }
 0xb4d   : > { %v5120_v55 = vsub.f32 %v5099_v33, %v1891_v51  ;;  %1905 = vadd.xlane.f32.xlu1 %v1904_v54  ;;  %v1901_v53 = vsel %vm975_vm4, %v1897_v50, 0.0  ;;  %v3277_v54 = vld [vmem:[%s5616_s11 + $0x1b0] sm:$0xff] }
 0xb4e   : > { %1902 = vadd.xlane.f32.xlu0 %v1901_v53  ;;  %v1900_v58 = vmul.f32 %v5116_v52, %v5116_v52 }
 0xb4f   : > { %v1899_v59 = vmul.f32 %v5120_v55, %v5120_v55 }
 0xb50   : > { %v1910_v60 = vsel %vm975_vm4, %v1900_v58, 0.0  ;;  %v3279_v58 = vld [vmem:[%s5616_s11 + $0x1c0] sm:$0xff] }
 0xb51   : > { %1911 = vadd.xlane.f32.xlu1 %v1910_v60  ;;  %v1907_v61 = vsel %vm975_vm4, %v1899_v59, 0.0  ;;  %v3280_v59 = vld [vmem:[%s5616_s11 + $0x1c8] sm:$0xff] }
 0xb52   : > { %1908 = vadd.xlane.f32.xlu0 %v1907_v61  ;;  %v4153_v60 = vpack.c.bf16 %v3280_v59, %v3279_v58  ;;  %v3281_v61 = vld [vmem:[%s5616_s11 + $0x1d0] sm:$0xff] }
 0xb53   : > { %v4157_v63 = vpack.c.bf16 %v3282_v62, %v3281_v61  ;;  %v2244_v61 = vld [vmem:[%s5620_s15] sm:$0xff]  ;;  %v2245_v62 = vld [vmem:[%s5620_s15 + $0x8] sm:$0xff] }
 0xbda   : > { %v1906_v16 = vpop.xlane.xlu1 %1905 }
 0xbdb   : > { %v1914_v17 = vmul.f32 0.015625, %v1906_v16  ;;  %v1903_v57 = vpop.xlane.xlu0 %1902 }
 0xbdc   : > { %v1913_v18 = vmul.f32 0.015625, %v1903_v57 }
 0xbdd   : > { %v1918_v19 = vadd.f32 1e-05, %v1914_v17 }
 0xbde   : > { %v1917_v3 = vadd.f32 1e-05, %v1913_v18  ;;  %v1912_v4 = vpop.xlane.xlu1 %1911 }
 0xbdf   : > { %4328 = vrsqrt.f32 %v1918_v19  ;;  %v1916_v20 = vmul.f32 0.015625, %v1912_v4  ;;  %v1909_v21 = vpop.xlane.xlu0 %1908 }
 0xbe0   : > { %4330 = vrsqrt.f32 %v1917_v3  ;;  %v1915_v22 = vmul.f32 0.015625, %v1909_v21 }
 0xbe1   : > { %v1920_v23 = vadd.f32 1e-05, %v1916_v20  ;;  %v3294_v20 = vld [vmem:[%s5617_s12 + $0x3] ss:$0 sm:$0xff] }
 0xbe2   : > { %v1919_v24 = vadd.f32 1e-05, %v1915_v22 }
 0xbe3   : > { %4332 = vrsqrt.f32 %v1920_v23 }
 0xbe4   : > { %4334 = vrsqrt.f32 %v1919_v24 }
 0xbe9   : > { %v4329_v26 = vpop.eup %4328 }
 0xbea   : > { %v4331_v27 = vpop.eup %4330  ;;  %v1930_v30 = vmul.f32 %v4329_v26, %v3287_v25 }
 0xbeb   : > { %v1929_v31 = vmul.f32 %v4331_v27, %v3287_v25 }
 0xbec   : > { %v1934_v34 = vmul.f32 %v1930_v30, %v5106_v39 }
 0xbed   : > { %v4333_v38 = vpop.eup %4332  ;;  %v1933_v32 = vmul.f32 %v1929_v31, %v5109_v46 }
 0xbee   : > { %v4335_v36 = vpop.eup %4334  ;;  %v1932_v44 = vmul.f32 %v4333_v38, %v3287_v25  ;;  %v1942_v39 = vadd.f32 %v3288_v35, %v1934_v34 }
 0xbef   : > { %v1941_v37 = vadd.f32 %v3288_v35, %v1933_v32  ;;  %v1931_v45 = vmul.f32 %v4335_v36, %v3287_v25 }
 0xbf0   : > { %v1936_v41 = vmul.f32 %v1932_v44, %v5116_v52  ;;  %v4145_v52 = vpack.c.bf16 %v3276_v49, %v3275_v48 }
 0xbf1   : > { %3781 = vmatprep.mubr.msk.f32.mxu1 %vm975_vm4, %v1941_v37  ;;  %v1935_v46 = vmul.f32 %v1931_v45, %v5120_v55  ;;  %v3278_v55 = vld [vmem:[%s5616_s11 + $0x1b8] sm:$0xff]  ;;  %v2162_v45 = vld [vmem:[%s5671_s1 + $0x10] sm:$0xff] }
 0xbf2   : > { %3782 = vmatmul.mubr.msk.f32.vlgmr.msra.gmra.mrb[16].mxu1 %vm975_vm4, %v1942_v39  ;;  %v1944_v50 = vadd.f32 %v3288_v35, %v1936_v41  ;;  %v4149_v53 = vpack.c.bf16 %v3278_v55, %v3277_v54  ;;  %v2163_v37 = vld [vmem:[%s5671_s1 + $0x18] sm:$0xff] }
 0xbf3   : > { %v1943_v51 = vadd.f32 %v3288_v35, %v1935_v46  ;;  %4140 = vmatpush3.bf16.msra.mxu1 %v4137_v56 }
 0xbf4   : > { %4142 = vmatprep.subr.bf16.mxu1 %v4141_v47 }
 0xbf5   : > { %3784 = vmatprep.mubr.msk.f32.mxu1 %vm975_vm4, %v1943_v51  ;;  %v2159_v51 = vld [vmem:[%s5672_s0] sm:$0x1]  ;;  %s712_s0 = scalar_lea.vmem [#allocation4], %s5512_s3 }
 0xbf6   : > { %3785 = vmatmul.mubr.msk.f32.gmra.mrb[18].mxu1 %vm975_vm4, %v1944_v50  ;;  %s3095_s2 = sshll.u32 %s712_s0, 4  ;;  %s3096_s2 = int_to_ptr.vmem [resolvable:$true] %s3095_s2 }
 0xbf7   : > { %4144 = vmatpush3.bf16.msra.mxu1 %v4141_v47  ;;  %s4348_s24 = scalar_lea.vmem %s3096_s2, 16  ;;  %p4355_p0 = scmp.lt.s32.totalorder %s3096_s2, %s4353_s6 }
 0xbf8   : > { %4146 = vmatprep.subr.bf16.mxu1 %v4145_v52  ;;  %p4349_p11 = scmp.ne.s32.totalorder %s3096_s2, %s4348_s24  ;;  %p4356_p1 = scmp.lt.s32.totalorder %s4354_s8, %s4348_s24 }
 0xbfa   : > { %p4350_p12 = pnand %p4349_p11, %p4608_p5  ;;  %p4357_p2 = por %p4356_p1, %p4355_p0 }
 0xbfb   : > { %4148 = vmatpush3.bf16.msra.mxu1 %v4145_v52 }
 0xbfc   : > { %4150 = vmatprep.subr.bf16.mxu1 %v4149_v53  ;;  %p4351_p13 = pneg %p4350_p12 }
 0xbfe   : > { %p4358_p3 = pnand %p4357_p2, %p4351_p13 }
 0xbff   : > { %4152 = vmatpush3.bf16.msra.mxu1 %v4149_v53 }
 0xc00   : > { %4154 = vmatprep.subr.bf16.mxu1 %v4153_v60 }
 0xc03   : > { %4156 = vmatpush3.bf16.msra.mxu1 %v4153_v60 }
 0xc04   : > { %4158 = vmatprep.subr.bf16.mxu1 %v4157_v63 }
 0xc07   : > { %4160 = vmatpush3.bf16.msra.mxu1 %v4157_v63  ;;  %v4176_v63 = vpack.c.bf16 %v2245_v62, %v2244_v61 }
 0xc08   : > { %4162 = vmatprep.subr.bf16.mxu1 %v4161_v6 }
 0xc0b   : > { %4164 = vmatpush3.bf16.msra.mxu1 %v4161_v6  ;;  %v4179_v6 = vpack.c.bf16 %v2247_v5, %v2246_v2 }
 0xc0c   : > { %4166 = vmatprep.subr.bf16.mxu1 %v4165_v9 }
 0xc0f   : > { %4168 = vmatpush3.bf16.msra.mxu1 %v4165_v9 }
 0xc10   : > { %4193 = vmatprep.subr.bf16.mxu1 %v4444_v0 }
 0xcc5   : > { %v3783_v11 = vpop.f32.mrb[16].mxu1 }
 0xcc6   : > { %v2033_v12 = vadd.f32 %v3783_v11, %v3289_v10  ;;  %v2027_v13 = vpop.f32.mrb[17].mxu1 }
 0xcc7   : > { %v2028_v14 = vadd.f32 %v3289_v10, %v2027_v13  ;;  %v2249_v13 = vld [vmem:[%s5622_s17] sm:$0xff] }
 0xcc8   : > { %v2047_v16 = vmax.f32 %v2033_v12, 0.0 }
 0xcc9   : > { %v2046_v15 = vmax.f32 %v2028_v14, 0.0  ;;  %v3786_v56 = vpop.f32.mrb[18].mxu1  ;;  %v2250_v14 = vld [vmem:[%s5622_s17 + $0x8] sm:$0xff] }
 0xcca   : > { %v2043_v17 = vadd.f32 %v3786_v56, %v3289_v10  ;;  %v2037_v57 = vpop.f32.mrb[19].mxu1 }
 0xccb   : > { %v2038_v18 = vadd.f32 %v3289_v10, %v2037_v57  ;;  %3819 = vmatprep.mubr.f32.mxu1 %v2046_v15  ;;  %v2242_v10 = vld [vmem:[%s5618_s13] sm:$0x1]  ;;  %v2251_v57 = vld [vmem:[%s5622_s17 + $0x10] sm:$0xff] }
 0xccc   : > { %3820 = vmatmul.mubr.f32.vlgmr.msra.gmra.mrb[20].mxu1 %v2047_v16  ;;  %v2049_v3 = vmax.f32 %v2043_v17, 0.0  ;;  %v2243_v15 = vld [vmem:[%s5619_s14] sm:$0x1]  ;;  %v4182_v16 = vpack.c.bf16 %v2250_v14, %v2249_v13  ;;  %v2441_v14 = vld [vmem:[%s5623_s18 + $0x1] sm:$0x1] }
 0xccd   : > { %v2048_v19 = vmax.f32 %v2038_v18, 0.0  ;;  %v2252_v18 = vld [vmem:[%s5622_s17 + $0x18] sm:$0xff] }
 0xccf   : > { %3822 = vmatprep.mubr.f32.mxu1 %v2048_v19  ;;  %v4185_v19 = vpack.c.bf16 %v2252_v18, %v2251_v57 }
 0xcd0   : > { %3823 = vmatmul.mubr.f32.gmra.mrb[22].mxu1 %v2049_v3  ;;  %v2253_v3 = vld [vmem:[%s5622_s17 + $0x20] sm:$0xff] }
 0xcd1   : > { %3874 = vmatprep.mubr.msk.f32.mxu1 %vm4445_vm0, %v4446_v1 }
 0xd9f   : > { %v3821_v4 = vpop.f32.mrb[20].mxu1 }
 0xda0   : > { %v2136_v21 = vadd.f32 %v3821_v4, %v5087_v28  ;;  %v2116_v22 = vpop.f32.mrb[21].mxu1  ;;  %v2254_v4 = vld [vmem:[%s5622_s17 + $0x28] sm:$0xff] }
 0xda1   : > { %v2135_v23 = vadd.f32 %v2116_v22, %v5089_v29  ;;  %v2256_v22 = vld [vmem:[%s5622_s17 + $0x38] sm:$0xff] }
 0xda2   : > { %v2144_v24 = vadd.f32 %v3294_v20, %v2136_v21  ;;  %v2255_v21 = vld [vmem:[%s5622_s17 + $0x30] sm:$0xff] }
 0xda3   : > { %v3824_v25 = vpop.f32.mrb[22].mxu1  ;;  %v2143_v26 = vadd.f32 %v3294_v20, %v2135_v23  ;;  %v4191_v23 = vpack.c.bf16 %v2256_v22, %v2255_v21  ;;  %v3312_v21 = vld [vmem:[%s5620_s15 + $0x40] sm:$0xff]  ;;  %v3313_v22 = vld [vmem:[%s5620_s15 + $0x48] sm:$0xff] }
 0xda4   : > { %v2138_v27 = vadd.f32 %v3824_v25, %v5097_v40  ;;  %v2126_v30 = vpop.f32.mrb[23].mxu1  ;;  %v2150_v31 = vsel %vm975_vm4, %v2144_v24, -inf  ;;  %v2161_v40 = vld [vmem:[%s5671_s1 + $0x8] sm:$0xff]  ;;  %v2248_v24 = vld [vmem:[%s5621_s16] sm:$0x1] }
 0xda5   : > { %v2137_v34 = vadd.f32 %v2126_v30, %v5099_v33  ;;  %2151 = vmax.xlane.f32.xlu1 %v2150_v31  ;;  %v2147_v35 = vsel %vm975_vm4, %v2143_v26, -inf  ;;  %v2160_v33 = vld [vmem:[%s5671_s1] sm:$0xff] }
 0xda6   : > { %2148 = vmax.xlane.f32.xlu0 %v2147_v35  ;;  %v2146_v38 = vadd.f32 %v3294_v20, %v2138_v27  ;;  %v2257_v31 = vld [vmem:[%s5623_s18] sm:$0x1] }
 0xda7   : > { %v2145_v32 = vadd.f32 %v3294_v20, %v2137_v34  ;;  %v4188_v20 = vpack.c.bf16 %v2254_v4, %v2253_v3 }
 0xda8   : > { %v2156_v28 = vsel %vm975_vm4, %v2146_v38, -inf }
 0xda9   : > { %2157 = vmax.xlane.f32.xlu1 %v2156_v28  ;;  %v2153_v29 = vsel %vm975_vm4, %v2145_v32, -inf }
 0xdaa   : > { %2154 = vmax.xlane.f32.xlu0 %v2153_v29 }
 0xe32   : > { %v2152_v42 = vpop.xlane.xlu1 %2151 }
 0xe33   : > { %v2165_v43 = vmul.f32 %v2161_v40, %v2152_v42  ;;  %v2149_v36 = vpop.xlane.xlu0 %2148 }
 0xe34   : > { %v2164_v44 = vmul.f32 %v2160_v33, %v2149_v36  ;;  %v3298_v36 = vld [vmem:[%s5620_s15 + $0x20] sm:$0xff] }
 0xe36   : > { %v4170_v39 = vpack.c.bf16 %v2165_v43, %v2164_v44  ;;  %v2158_v41 = vpop.xlane.xlu1 %2157  ;;  %v3299_v44 = vld [vmem:[%s5620_s15 + $0x28] sm:$0xff] }
 0xe37   : > { %v2167_v47 = vmul.f32 %v2163_v37, %v2158_v41  ;;  %v2155_v46 = vpop.xlane.xlu0 %2154  ;;  %v4194_v37 = vpack.c.bf16 %v3299_v44, %v3298_v36  ;;  %v3319_v36 = vld [vmem:[%s5622_s17 + $0x98] sm:$0xff] }
 0xe38   : > { %v2166_v48 = vmul.f32 %v2162_v45, %v2155_v46  ;;  %4171 = vmatpush3.bf16.msra.mxu0 %v4170_v39  ;;  %v3300_v45 = vld [vmem:[%s5620_s15 + $0x30] sm:$0xff]  ;;  %v3301_v39 = vld [vmem:[%s5620_s15 + $0x38] sm:$0xff]  ;;  %v3303_v46 = vld [vmem:[%s5622_s17 + $0x48] sm:$0xff] }
 0xe39   : > { %4172 = vmatprep.subr.bf16.mxu0 %v4444_v0  ;;  %4195 = vmatpush3.bf16.msra.mxu1 %v4194_v37  ;;  %v4197_v41 = vpack.c.bf16 %v3301_v39, %v3300_v45  ;;  %v3320_v37 = vld [vmem:[%s5622_s17 + $0xa0] sm:$0xff]  ;;  %v3321_v45 = vld [vmem:[%s5622_s17 + $0xa8] sm:$0xff] }
 0xe3a   : > { %v4173_v49 = vpack.c.bf16 %v2167_v47, %v2166_v48  ;;  %4196 = vmatprep.subr.bf16.mxu1 %v4444_v0  ;;  %v3302_v47 = vld [vmem:[%s5622_s17 + $0x40] sm:$0xff]  ;;  %v3304_v48 = vld [vmem:[%s5622_s17 + $0x50] sm:$0xff]  ;;  %v4224_v39 = vpack.c.bf16 %v3321_v45, %v3320_v37 }
 0xe3b   : > { %v2974_v45 = vld [vmem:[%s5625_s20] sm:$0x1] }
 0xe3c   : > { %4174 = vmatpush3.bf16.msra.mxu0 %v4173_v49  ;;  %v4200_v49 = vpack.c.bf16 %v3303_v46, %v3302_v47  ;;  %v3323_v47 = vld [vmem:[%s5622_s17 + $0xb8] sm:$0xff] }
 0xe3d   : > { %4175 = vmatprep.subr.bf16.mxu0 %v4444_v0  ;;  %4198 = vmatpush3.bf16.msra.mxu1 %v4197_v41  ;;  %v3322_v41 = vld [vmem:[%s5622_s17 + $0xb0] sm:$0xff] }
 0xe3e   : > { %4211 = vmatprep.subr.bf16.mxu1 %v4444_v0  ;;  %v4227_v46 = vpack.c.bf16 %v3323_v47, %v3322_v41  ;;  %v3048_v41 = vld [vmem:[%s5626_s21] sm:$0x1] }
 0xe3f   : > { %3834 = vmatmul.mubr.msk.f32.vlgmr.msra.gmra.mrb[18].mxu0 %vm2168_vm5, %v2159_v51  ;;  %v3305_v51 = vld [vmem:[%s5622_s17 + $0x58] sm:$0xff] }
 0xe40   : > { %3844 = vmatprep.mubr.msk.f32.mxu0 %vm4445_vm0, %v4446_v1  ;;  %4177 = vmatpush3.bf16.msra.mxu0 %v4176_v63  ;;  %v2425_v63 = vld [vmem:[%s5619_s14 + $0x1] sm:$0x1] }
 0xe41   : > { %4178 = vmatprep.subr.bf16.mxu0 %v4444_v0 }
 0xe44   : > { %4180 = vmatpush3.bf16.msra.mxu0 %v4179_v6  ;;  %v3308_v6 = vld [vmem:[%s5622_s17 + $0x70] sm:$0xff] }
 0xe45   : > { %4181 = vmatprep.subr.bf16.mxu0 %v4444_v0 }
 0xf12   : > { %v2238_v50 = vpop.f32.mrb[18].mxu0 }
 0xf13   : > { %v3835_v52 = vpop.f32.mrb[19].mxu0  ;;  %v2259_v54 = vsel %vm2258_vm6, %v2238_v50, 0.0 }
 0xf14   : > { %2260 = vadd.xlane.f32.xlu0 %v2259_v54  ;;  %v3306_v52 = vld [vmem:[%s5622_s17 + $0x60] sm:$0xff]  ;;  %v3307_v54 = vld [vmem:[%s5622_s17 + $0x68] sm:$0xff] }
 0xfa1   : > { %v2261_v55 = vpop.xlane.xlu0 %2260 }
 0xfa2   : > { %v2263_v53 = vmul.f32 0.03125, %v2261_v55  ;;  %v4206_v55 = vpack.c.bf16 %v3307_v54, %v3306_v52  ;;  %v2623_v54 = vld [vmem:[%s5623_s18 + $0x2] sm:$0x1] }
 0xfa4   : > { %v2264_v58 = vsub.f32 %v2238_v50, %v2263_v53 }
 0xfa6   : > { %v2265_v59 = vmul.f32 %v2264_v58, %v2264_v58 }
 0xfa8   : > { %v2266_v60 = vsel %vm2258_vm6, %v2265_v59, 0.0 }
 0xfa9   : > { %2267 = vadd.xlane.f32.xlu1 %v2266_v60  ;;  %v2424_v60 = vld [vmem:[%s5618_s13 + $0x1] sm:$0x1] }
0x1036   : > { %v2268_v7 = vpop.xlane.xlu1 %2267 }
0x1037   : > { %v2269_v8 = vmul.f32 0.03125, %v2268_v7  ;;  %v3309_v7 = vld [vmem:[%s5622_s17 + $0x78] sm:$0xff] }
0x1039   : > { %v2270_v9 = vadd.f32 1e-05, %v2269_v8  ;;  %v4209_v8 = vpack.c.bf16 %v3309_v7, %v3308_v6  ;;  %v3326_v6 = vld [vmem:[%s5620_s15 + $0x60] sm:$0xff]  ;;  %v3327_v7 = vld [vmem:[%s5620_s15 + $0x68] sm:$0xff] }
0x103b   : > { %4336 = vrsqrt.f32 %v2270_v9  ;;  %v2431_v9 = vld [vmem:[%s5621_s16 + $0x1] sm:$0x1] }
0x1045   : > { %v4337_v11 = vpop.eup %4336 }
0x1046   : > { %v2272_v12 = vmul.f32 %v4337_v11, %v2242_v10 }
0x1048   : > { %v2273_v56 = vmul.f32 %v2272_v12, %v2264_v58 }
0x104a   : > { %v2274_v17 = vadd.f32 %v2273_v56, %v2243_v15 }
0x104c   : > { %3845 = vmatmul.mubr.msk.f32.vlgmr.msra.gmra.mrb[20].mxu0 %vm2168_vm5, %v2274_v17 }
0x104d   : > { %4183 = vmatpush3.bf16.msra.mxu0 %v4182_v16  ;;  %3863 = vmatprep.mubr.msk.f32.mxu0 %vm4445_vm0, %v4446_v1 }
0x104e   : > { %4184 = vmatprep.subr.bf16.mxu0 %v4444_v0 }
0x1051   : > { %4186 = vmatpush3.bf16.msra.mxu0 %v4185_v19 }
0x1052   : > { %4187 = vmatprep.subr.bf16.mxu0 %v4444_v0 }
0x1055   : > { %4189 = vmatpush3.bf16.msra.mxu0 %v4188_v20 }
0x1056   : > { %4190 = vmatprep.subr.bf16.mxu0 %v4444_v0 }
0x1059   : > { %4192 = vmatpush3.bf16.msra.mxu0 %v4191_v23  ;;  %v4212_v23 = vpack.c.bf16 %v3313_v22, %v3312_v21  ;;  %v3333_v21 = vld [vmem:[%s5622_s17 + $0xd8] sm:$0xff] }
0x105a   : > { %4199 = vmatprep.subr.bf16.mxu0 %v4444_v0 }
0x111f   : > { %v2344_v25 = vpop.f32.mrb[20].mxu0 }
0x1120   : > { %v2345_v26 = vadd.f32 %v2344_v25, %v2248_v24  ;;  %v3846_v27 = vpop.f32.mrb[21].mxu0  ;;  %v3314_v24 = vld [vmem:[%s5620_s15 + $0x50] sm:$0xff]  ;;  %v3315_v25 = vld [vmem:[%s5620_s15 + $0x58] sm:$0xff] }
0x1122   : > { %v2348_v30 = vmax.f32 %v2345_v26, 0.0  ;;  %v4215_v26 = vpack.c.bf16 %v3315_v25, %v3314_v24  ;;  %v3335_v24 = vld [vmem:[%s5622_s17 + $0xe8] sm:$0xff] }
0x1124   : > { %3864 = vmatmul.mubr.msk.f32.vlgmr.msra.gmra.mrb[22].mxu0 %vm975_vm4, %v2348_v30 }
0x1125   : > { %3893 = vmatprep.mubr.msk.f32.mxu0 %vm4445_vm0, %v4446_v1  ;;  %4201 = vmatpush3.bf16.msra.mxu0 %v4200_v49 }
0x1126   : > { %4202 = vmatprep.subr.bf16.mxu0 %v4444_v0 }
0x11f7   : > { %v2418_v34 = vpop.f32.mrb[22].mxu0 }
0x11f8   : > { %v2422_v35 = vadd.f32 %v2418_v34, %v2238_v50  ;;  %v3865_v38 = vpop.f32.mrb[23].mxu0  ;;  %v4203_v50 = vpack.c.bf16 %v3305_v51, %v3304_v48  ;;  %v2606_v34 = vld [vmem:[%s5618_s13 + $0x2] sm:$0x1] }
0x11f9   : > { %v2613_v48 = vld [vmem:[%s5621_s16 + $0x2] sm:$0x1] }
0x11fa   : > { %v2423_v32 = vadd.f32 %v2422_v35, %v2257_v31  ;;  %4204 = vmatpush3.bf16.msra.mxu0 %v4203_v50 }
0x11fb   : > { %4205 = vmatprep.subr.bf16.mxu0 %v4444_v0 }
0x11fc   : > { %v2442_v28 = vsel %vm2258_vm6, %v2423_v32, 0.0 }
0x11fd   : > { %2443 = vadd.xlane.f32.xlu0 %v2442_v28  ;;  %v3317_v28 = vld [vmem:[%s5622_s17 + $0x88] sm:$0xff] }
0x11fe   : > { %4207 = vmatpush3.bf16.msra.mxu0 %v4206_v55 }
0x11ff   : > { %4208 = vmatprep.subr.bf16.mxu0 %v4444_v0 }
0x1202   : > { %4210 = vmatpush3.bf16.msra.mxu0 %v4209_v8  ;;  %v4230_v8 = vpack.c.bf16 %v3327_v7, %v3326_v6 }
0x1203   : > { %4229 = vmatprep.subr.bf16.mxu0 %v4444_v0 }
0x128a   : > { %v2444_v29 = vpop.xlane.xlu0 %2443 }
0x128b   : > { %v2445_v40 = vmul.f32 0.03125, %v2444_v29  ;;  %v2607_v29 = vld [vmem:[%s5619_s14 + $0x2] sm:$0x1] }
0x128d   : > { %v2446_v33 = vsub.f32 %v2423_v32, %v2445_v40 }
0x128f   : > { %v2447_v42 = vmul.f32 %v2446_v33, %v2446_v33 }
0x1291   : > { %v2448_v43 = vsel %vm2258_vm6, %v2447_v42, 0.0 }
0x1292   : > { %2449 = vadd.xlane.f32.xlu1 %v2448_v43  ;;  %v3318_v43 = vld [vmem:[%s5622_s17 + $0x90] sm:$0xff] }
0x1293   : > { %v4221_v44 = vpack.c.bf16 %v3319_v36, %v3318_v43 }
0x131f   : > { %v2450_v53 = vpop.xlane.xlu1 %2449 }
0x1320   : > { %v2451_v58 = vmul.f32 0.03125, %v2450_v53 }
0x1322   : > { %v2452_v59 = vadd.f32 1e-05, %v2451_v58 }
0x1324   : > { %4338 = vrsqrt.f32 %v2452_v59 }
0x132e   : > { %v4339_v61 = vpop.eup %4338 }
0x132f   : > { %v2454_v62 = vmul.f32 %v4339_v61, %v2424_v60 }
0x1331   : > { %v2455_v2 = vmul.f32 %v2454_v62, %v2446_v33 }
0x1333   : > { %v2456_v5 = vadd.f32 %v2455_v2, %v2425_v63 }
0x1335   : > { %3875 = vmatmul.mubr.msk.f32.vlgmr.msra.gmra.mrb[24].mxu1 %vm2168_vm5, %v2456_v5 }
0x1336   : > { %3904 = vmatprep.mubr.msk.f32.mxu1 %vm4445_vm0, %v4446_v1  ;;  %4213 = vmatpush3.bf16.msra.mxu1 %v4212_v23  ;;  %v3334_v23 = vld [vmem:[%s5622_s17 + $0xe0] sm:$0xff] }
0x1337   : > { %4214 = vmatprep.subr.bf16.mxu1 %v4444_v0  ;;  %v4242_v25 = vpack.c.bf16 %v3335_v24, %v3334_v23 }
0x133a   : > { %4216 = vmatpush3.bf16.msra.mxu1 %v4215_v26  ;;  %v3337_v26 = vld [vmem:[%s5622_s17 + $0xf8] sm:$0xff] }
0x133b   : > { %4217 = vmatprep.subr.bf16.mxu1 %v4444_v0 }
0x1408   : > { %v2526_v10 = vpop.f32.mrb[24].mxu1 }
0x1409   : > { %v2527_v11 = vadd.f32 %v2526_v10, %v2431_v9  ;;  %v3876_v12 = vpop.f32.mrb[25].mxu1  ;;  %v3328_v9 = vld [vmem:[%s5620_s15 + $0x70] sm:$0xff]  ;;  %v3329_v10 = vld [vmem:[%s5620_s15 + $0x78] sm:$0xff] }
0x140b   : > { %v2530_v13 = vmax.f32 %v2527_v11, 0.0  ;;  %v4233_v11 = vpack.c.bf16 %v3329_v10, %v3328_v9 }
0x140d   : > { %3894 = vmatmul.mubr.msk.f32.vlgmr.msra.gmra.mrb[24].mxu0 %vm975_vm4, %v2530_v13 }
0x140e   : > { %3934 = vmatprep.mubr.msk.f32.mxu0 %vm4445_vm0, %v4446_v1  ;;  %4231 = vmatpush3.bf16.msra.mxu0 %v4230_v8 }
0x140f   : > { %4232 = vmatprep.subr.bf16.mxu0 %v4444_v0 }
0x1412   : > { %4234 = vmatpush3.bf16.msra.mxu0 %v4233_v11 }
0x1413   : > { %4235 = vmatprep.subr.bf16.mxu0 %v4444_v0 }
0x14e0   : > { %v2600_v15 = vpop.f32.mrb[24].mxu0 }
0x14e1   : > { %v2604_v56 = vadd.f32 %v2600_v15, %v2423_v32  ;;  %v3895_v16 = vpop.f32.mrb[25].mxu0  ;;  %v3316_v32 = vld [vmem:[%s5622_s17 + $0x80] sm:$0xff] }
0x14e2   : > { %v4218_v33 = vpack.c.bf16 %v3317_v28, %v3316_v32  ;;  %v2788_v15 = vld [vmem:[%s5618_s13 + $0x3] sm:$0x1] }
0x14e3   : > { %v2605_v17 = vadd.f32 %v2604_v56, %v2441_v14 }
0x14e5   : > { %v2624_v57 = vsel %vm2258_vm6, %v2605_v17, 0.0 }
0x14e6   : > { %2625 = vadd.xlane.f32.xlu0 %v2624_v57  ;;  %v3331_v57 = vld [vmem:[%s5622_s17 + $0xc8] sm:$0xff] }
0x1573   : > { %v2626_v18 = vpop.xlane.xlu0 %2625 }
0x1574   : > { %v2627_v19 = vmul.f32 0.03125, %v2626_v18  ;;  %v2789_v18 = vld [vmem:[%s5619_s14 + $0x3] sm:$0x1] }
0x1576   : > { %v2628_v3 = vsub.f32 %v2605_v17, %v2627_v19 }
0x1578   : > { %v2629_v4 = vmul.f32 %v2628_v3, %v2628_v3 }
0x157a   : > { %v2630_v20 = vsel %vm2258_vm6, %v2629_v4, 0.0 }
0x157b   : > { %2631 = vadd.xlane.f32.xlu1 %v2630_v20  ;;  %v3332_v20 = vld [vmem:[%s5622_s17 + $0xd0] sm:$0xff] }
0x157c   : > { %v4239_v22 = vpack.c.bf16 %v3333_v21, %v3332_v20 }
0x1608   : > { %v2632_v27 = vpop.xlane.xlu1 %2631 }
0x1609   : > { %v2633_v30 = vmul.f32 0.03125, %v2632_v27 }
0x160b   : > { %v2634_v31 = vadd.f32 1e-05, %v2633_v30  ;;  %v2970_v30 = vld [vmem:[%s5624_s19] sm:$0xff] }
0x160d   : > { %4340 = vrsqrt.f32 %v2634_v31  ;;  %v2971_v31 = vld [vmem:[%s5624_s19 + $0x8] sm:$0xff] }
0x1617   : > { %v4341_v35 = vpop.eup %4340 }
0x1618   : > { %v2636_v38 = vmul.f32 %v4341_v35, %v2606_v34  ;;  %v4248_v34 = vpack.c.bf16 %v2971_v31, %v2970_v30  ;;  %v2795_v35 = vld [vmem:[%s5621_s16 + $0x3] sm:$0x1] }
0x161a   : > { %v2637_v40 = vmul.f32 %v2636_v38, %v2628_v3 }
0x161c   : > { %v2638_v42 = vadd.f32 %v2637_v40, %v2607_v29  ;;  %v2972_v40 = vld [vmem:[%s5624_s19 + $0x10] sm:$0xff] }
0x161e   : > { %3905 = vmatmul.mubr.msk.f32.vlgmr.msra.gmra.mrb[26].mxu1 %vm2168_vm5, %v2638_v42 }
0x161f   : > { %4219 = vmatpush3.bf16.msra.mxu1 %v4218_v33  ;;  %3923 = vmatprep.mubr.msk.f32.mxu1 %vm4445_vm0, %v4446_v1  ;;  %v2973_v33 = vld [vmem:[%s5624_s19 + $0x18] sm:$0xff] }
0x1620   : > { %4220 = vmatprep.subr.bf16.mxu1 %v4444_v0  ;;  %v4251_v42 = vpack.c.bf16 %v2973_v33, %v2972_v40 }
0x1623   : > { %4222 = vmatpush3.bf16.msra.mxu1 %v4221_v44 }
0x1624   : > { %4223 = vmatprep.subr.bf16.mxu1 %v4444_v0 }
0x1627   : > { %4225 = vmatpush3.bf16.msra.mxu1 %v4224_v39 }
0x1628   : > { %4226 = vmatprep.subr.bf16.mxu1 %v4444_v0 }
0x162b   : > { %4228 = vmatpush3.bf16.msra.mxu1 %v4227_v46 }
0x162c   : > { %4247 = vmatprep.subr.bf16.mxu1 %v4444_v0 }
0x16f1   : > { %v2708_v49 = vpop.f32.mrb[26].mxu1 }
0x16f2   : > { %v2709_v51 = vadd.f32 %v2708_v49, %v2613_v48  ;;  %v3906_v50 = vpop.f32.mrb[27].mxu1 }
0x16f4   : > { %v2712_v52 = vmax.f32 %v2709_v51, 0.0 }
0x16f6   : > { %3924 = vmatmul.mubr.msk.f32.vlgmr.msra.gmra.mrb[28].mxu1 %vm975_vm4, %v2712_v52 }
0x16f7   : > { %3964 = vmatprep.mubr.msk.f32.mxu1 %vm4445_vm0, %v4446_v1  ;;  %4249 = vmatpush3.bf16.msra.mxu1 %v4248_v34 }
0x16f8   : > { %4250 = vmatprep.subr.bf16.mxu1 %v4444_v0 }
0x16fb   : > { %4252 = vmatpush3.bf16.msra.mxu1 %v4251_v42 }
0x17c9   : > { %v2782_v55 = vpop.f32.mrb[28].mxu1 }
0x17ca   : > { %v2786_v53 = vadd.f32 %v2782_v55, %v2605_v17  ;;  %v3925_v58 = vpop.f32.mrb[29].mxu1  ;;  %v3330_v17 = vld [vmem:[%s5622_s17 + $0xc0] sm:$0xff] }
0x17cb   : > { %v4236_v3 = vpack.c.bf16 %v3331_v57, %v3330_v17 }
0x17cc   : > { %v5438_v59 = vadd.f32 %v2786_v53, %v2623_v54 }
0x17ce   : > { %v2806_v60 = vsel %vm2258_vm6, %v5438_v59, 0.0 }
0x17cf   : > { %2807 = vadd.xlane.f32.xlu0 %v2806_v60 }
0x185c   : > { %v2808_v61 = vpop.xlane.xlu0 %2807 }
0x185d   : > { %v2809_v62 = vmul.f32 0.03125, %v2808_v61 }
0x185f   : > { %v2810_v63 = vsub.f32 %v5438_v59, %v2809_v62 }
0x1861   : > { %v2811_v2 = vmul.f32 %v2810_v63, %v2810_v63 }
0x1863   : > { %v2812_v5 = vsel %vm2258_vm6, %v2811_v2, 0.0 }
0x1864   : > { %2813 = vadd.xlane.f32.xlu1 %v2812_v5 }
0x18f1   : > { %v2814_v12 = vpop.xlane.xlu1 %2813 }
0x18f2   : > { %v2815_v13 = vmul.f32 0.03125, %v2814_v12 }
0x18f4   : > { %v2816_v14 = vadd.f32 1e-05, %v2815_v13 }
0x18f6   : > { %4342 = vrsqrt.f32 %v2816_v14 }
0x1900   : > { %v4343_v56 = vpop.eup %4342 }
0x1901   : > { %v2818_v16 = vmul.f32 %v4343_v56, %v2788_v15 }
0x1903   : > { %v2819_v19 = vmul.f32 %v2818_v16, %v2810_v63 }
0x1905   : > { %v2820_v4 = vadd.f32 %v2819_v19, %v2789_v18 }
0x1907   : > { %3935 = vmatmul.mubr.msk.f32.vlgmr.msra.gmra.mrb[26].mxu0 %vm2168_vm5, %v2820_v4 }
0x1908   : > { %4237 = vmatpush3.bf16.msra.mxu0 %v4236_v3  ;;  %3953 = vmatprep.mubr.msk.f32.mxu0 %vm4445_vm0, %v4446_v1  ;;  %v3336_v1 = vld [vmem:[%s5622_s17 + $0xf0] sm:$0xff] }
0x1909   : > { %4238 = vmatprep.subr.bf16.mxu0 %v4444_v0  ;;  %v4245_v27 = vpack.c.bf16 %v3337_v26, %v3336_v1 }
0x190c   : > { %4240 = vmatpush3.bf16.msra.mxu0 %v4239_v22 }
0x190d   : > { %4241 = vmatprep.subr.bf16.mxu0 %v4444_v0 }
0x1910   : > { %4243 = vmatpush3.bf16.msra.mxu0 %v4242_v25 }
0x1911   : > { %4244 = vmatprep.subr.bf16.mxu0 %v4444_v0  ;;  %v2805_v0 = vld [vmem:[%s5623_s18 + $0x3] sm:$0x1] }
0x1914   : > { %4246 = vmatpush3.bf16.msra.mxu0 %v4245_v27 }
0x19da   : > { %v2890_v38 = vpop.f32.mrb[26].mxu0 }
0x19db   : > { %v2891_v32 = vadd.f32 %v2890_v38, %v2795_v35  ;;  %v3936_v28 = vpop.f32.mrb[27].mxu0 }
0x19dd   : > { %v2894_v29 = vmax.f32 %v2891_v32, 0.0 }
0x19df   : > { %3954 = vmatmul.mubr.msk.f32.vlgmr.msra.gmra.mrb[28].mxu0 %vm975_vm4, %v2894_v29 }
0x1ab2   : > { %v2964_v43 = vpop.f32.mrb[28].mxu0 }
0x1ab3   : > { %v2968_v36 = vadd.f32 %v2964_v43, %v5438_v59  ;;  %v3955_v44 = vpop.f32.mrb[29].mxu0 }
0x1ab5   : > { %v2969_v37 = vadd.f32 %v2968_v36, %v2805_v0 }
0x1ab7   : > { %3965 = vmatmul.mubr.msk.f32.vlgmr.msra.gmra.mrb[30].mxu1 %vm2168_vm5, %v2969_v37  ;;  %3064 = vst.msk [vmem:[%s712_s0] sm:$0x1] %vm2258_vm6, %v2969_v37 }
0x1b8a   : > { %v3044_v39 = vpop.f32.mrb[30].mxu1 }
0x1b8b   : > { %v3045_v47 = vadd.f32 %v3044_v39, %v2974_v45  ;;  %v3966_v46 = vpop.f32.mrb[31].mxu1 }
0x1b8d   : > { %v3049_v48 = vadd.f32 %v3048_v41, %v3045_v47 }
0x1b8f   : > { %v3051_v49 = vsel %vm3050_vm7, %v3049_v48, -inf }
0x1b90   : > { %3052 = vmax.xlane.f32.xlu0 %v3051_v49 }
0x1c1d   : > { %v3053_v51 = vpop.xlane.xlu0 %3052 }
0x1c1e   : > { %v3054_v50 = vsub.f32 %v3049_v48, %v3053_v51 }
0x1c20   : > { %v3055_v52 = vmul.f32 1.442695, %v3054_v50 }
0x1c22   : > { %4344 = vpow2.f32 %v3055_v52 }
0x1c2c   : > { %v4345_v54 = vpop.eup %4344 }
0x1c2d   : > { %v3057_v55 = vsel %vm3050_vm7, %v4345_v54, 0.0 }
0x1c2e   : > { %3058 = vadd.xlane.f32.xlu1 %v3057_v55 }
0x1c2f   : > { %4361 = shalt.err (!%p4358_p3)
}
0x1c30   : > { %s4362_s0 = scalar_lea.hbm %s5535_s27, 16  ;;  %s4366_s26 = scalar_lea.hbm %s5628_s23, 32 }
0x1c31   : > { %p4363_p4 = scmp.ne.s32.totalorder %s5535_s27, %s4362_s0  ;;  %p4367_p9 = scmp.lt.u32.totalorder %s5535_s27, %s5628_s23 }
0x1c32   : > { %p4368_p10 = scmp.lt.u32.totalorder %s4366_s26, %s4362_s0  ;;  %p4370_p12 = scmp.lt.u32.totalorder %s4362_s0, %s5535_s27 }
0x1c33   : > { %p4364_p7 = pnand %p4363_p4, %p4608_p5 }
0x1c34   : > { %p4369_p11 = por %p4368_p10, %p4367_p9 }
0x1c35   : > { %p4365_p8 = pneg %p4364_p7 }
0x1c36   : > { %p4371_p13 = por %p4370_p12, %p4369_p11 }
0x1c38   : > { %p4372_p0 = pnand %p4371_p13, %p4365_p8 }
0x1c3a   : > { %4375 = shalt.err (!%p4372_p0)
}
0x1c3b   : > { %4255 = dma.vmem_to_hbm [thread:$0]  (%p4608_p5), %s3096_s2, 16, %s5535_s27, %s3070_s29  }
0x1c3c   : > { %s706_s8 = scalar_lea.vmem [#allocation2], %s5512_s3  ;;  %s5673_s24 = sshll.u32 %s4591_s5, 4 }
0x1c3d   : > { %s3082_s4 = sshll.u32 %s706_s8, 4  ;;  %s5561_s25 = scalar_lea.hbm %s5627_s22, %s5673_s24  ;;  %s5563_s4 = int_to_ptr.vmem [resolvable:$true] %s3082_s4 }
0x1c3e   : > { %s3066_s27 = scalar_lea.sflag [#allocation3], %s5512_s3  ;;  %s4376_s2 = scalar_lea.vmem %s5563_s4, 16 }
0x1c3f   : > { %p4377_p1 = scmp.ne.s32.totalorder %s5563_s4, %s4376_s2  ;;  %s4449_s29 = smov [#allocation2]  }
0x1c40   : > { %s4380_s5 = sshll.u32 %s4449_s29, 4  ;;  %s4381_s5 = int_to_ptr.vmem [resolvable:$false] %s4380_s5 }
0x1c41   : > { %p4378_p2 = pnand %p4377_p1, %p4608_p5  ;;  %s4382_s26 = scalar_lea.vmem %s4381_s5, 32 }
0x1c42   : > { %p4383_p4 = scmp.lt.s32.totalorder %s5563_s4, %s4381_s5  ;;  %p4384_p7 = scmp.lt.s32.totalorder %s4382_s26, %s4376_s2 }
0x1c43   : > { %p4379_p3 = pneg %p4378_p2 }
0x1c44   : > { %p4385_p8 = por %p4384_p7, %p4383_p4 }
0x1c46   : > { %p4386_p9 = pnand %p4385_p8, %p4379_p3 }
0x1cbb   : > { %v3059_v53 = vpop.xlane.xlu1 %3058 }
0x1cbc   : > { %4346 = vlog2.f32 %v3059_v53 }
0x1cc6   : > { %v4347_v58 = vpop.eup %4346 }
0x1cc7   : > { %v3061_v59 = vmul.f32 0.6931472, %v4347_v58 }
0x1cc9   : > { %v3062_v60 = vsub.f32 %v3054_v50, %v3061_v59 }
0x1ccb   : > { %3063 = vst.msk [vmem:[%s706_s8] sm:$0x1] %vm3050_vm7, %v3062_v60 }
0x1ccc   : > { %4389 = shalt.err (!%p4386_p9)
}
0x1ccd   : > { %s4390_s3 = scalar_lea.hbm %s5561_s25, 16  ;;  %s4394_s24 = scalar_lea.hbm %s5627_s22, 32 }
0x1cce   : > { %p4391_p10 = scmp.ne.s32.totalorder %s5561_s25, %s4390_s3  ;;  %p4395_p13 = scmp.lt.u32.totalorder %s5561_s25, %s5627_s22 }
0x1ccf   : > { %p4396_p0 = scmp.lt.u32.totalorder %s4394_s24, %s4390_s3  ;;  %p4398_p2 = scmp.lt.u32.totalorder %s4390_s3, %s5561_s25 }
0x1cd0   : > { %p4392_p11 = pnand %p4391_p10, %p4608_p5 }
0x1cd1   : > { %p4397_p1 = por %p4396_p0, %p4395_p13 }
0x1cd2   : > { %p4393_p12 = pneg %p4392_p11 }
0x1cd3   : > { %p4399_p3 = por %p4398_p2, %p4397_p1 }
0x1cd5   : > { %p4400_p4 = pnand %p4399_p3, %p4393_p12 }
0x1cd7   : > { %4403 = shalt.err (!%p4400_p4)
}
0x1cd8   : > { %4254 = dma.vmem_to_hbm [thread:$0]  (%p4608_p5), %s5563_s4, 16, %s5561_s25, %s3066_s27  }
0x1cd9 PF: > { %s5674_s2 = sld [smem:[#allocation10_spill]]  ;;  %s5675_s29 = sld [smem:[#allocation8_spill]] }
0x1cdf   : > { %p4265_p7 = scmp.ge.s32.totalorder %s5674_s2, 2  ;;  %s3107_s26 = sand.u32 1, %s5675_s29  }
0x1ce0   : > { %s3108_s6 = scalar_lea.sflag [#allocation3], %s3107_s26 }
0x1ce1   : > { %p4259_p8 = pnand %p4265_p7, %p4612_p6 }
0x1ce3   : > { %4421 = dma.done.wait (!%p4259_p8), %s3108_s6, 16  }
0x1ce4   : > { %4423 = vsyncadd (!%p4259_p8), %s3108_s6, 4294967280  ;;  %s3116_s3 = scalar_lea.sflag [#allocation5], %s3107_s26 }
0x1ce5   : > { %4425 = dma.done.wait (!%p4259_p8), %s3116_s3, 16  }
0x1ce6   : > { %4427 = vsyncadd (!%p4259_p8), %s3116_s3, 4294967280  ;;  %s5677_s25 = sld [smem:[#allocation11_spill]]  ;;  %s5678_s7 = sld [smem:[#allocation9_spill]] }
0x1ce7   : > { %s5679_s24 = sld [smem:[#allocation12_spill]]  ;;  %s5680_s4 = smov %s4434_s30 }
0x1cec   : > { %p37_p5 = scmp.ge.s32.totalorder %s5677_s25, 4   ;;  %s5681_s30 = smov %s5678_s7 }
0x1cee   :  { %39 = sbr.rel (!%p37_p5) target bundleno = 15 (0xf), region = 172 }
0x1cf5   :  { %3120 = vsyncpa [#allocation3], 1 }
0x1cf6   :  { %3122 = vsyncpa [#allocation3 + $0x1], 1 }
0x1cf7   :  { %3123 = vsyncpa [#allocation5], 1 }
0x1cf8   :  { %3125 = vsyncpa [#allocation5 + $0x1], 1 }

</bundles_post_ra>
